<compile_context>
chip_gen: v7x
topology: tpu7x:2x2x1
jax: 0.10.0
libtpu: 0.0.40
codegen_flags: <defaults>
</compile_context>

<pallas_src>
from functools import partial

import jax
import jax.numpy as jnp
from jax import lax
from jax.experimental import pallas as pl
from jax.experimental.pallas import tpu as pltpu

K = 4        # kernel_size
STRIDE = 2
PAD = 1
EPS = 1e-5   # InstanceNorm2d default


def _round_up(x, m):
    return (x + m - 1) // m * m


def _convt_phase_kernel(x_ref, w_ref, rc_ref, ph_ref,
                        y_ref, sum_ref, sq_ref, *, h, w, cout, tile):
    """Pass 1: sub-pixel transposed conv + per-tile InstanceNorm partials.

    x_ref : (1, rows_in, Cin)   flattened zero-padded input (resident per image)
    w_ref : (4, Cin, 4*Cout)    folded taps: w[2*dh+dw, i, (2*rh+rw)*Cout + o]
    rc_ref: (tile, 2)           (r, c) grid coords of each flat output row
    ph_ref: (2, 4*Cout)         (rh, rw) of the phase owning each output lane
    y_ref : (1, tile, 4*Cout)   conv output tile (masked, unnormalized)
    sum_ref, sq_ref: (1, 1, 1, 4*Cout)  per-tile partial sum / sum-of-squares
    """
    wp2 = w + 2
    t = pl.program_id(1)
    base = pl.multiple_of(t * tile, 8)

    acc = None
    for dh in range(2):
        for dw in range(2):
            # Contiguous row slab of the flattened input: tap (dh, dw).
            xs = x_ref[0, pl.ds(base + dh * wp2 + dw, tile), :]
            d = jnp.dot(xs, w_ref[2 * dh + dw],
                        preferred_element_type=jnp.float32)
            acc = d if acc is None else acc + d           # (tile, 4*Cout) f32

    # Validity mask per (row, phase-lane): phase (rh, rw) owns output (a, b)
    # which lives at grid coords r = a + rh, c = b + rw.
    rc = rc_ref[...]                                      # (tile, 2) int32
    r = rc[:, 0:1]
    c = rc[:, 1:2]                                        # (tile, 1)
    rh = ph_ref[0:1, :]
    rw = ph_ref[1:2, :]                                   # (1, 4*Cout)
    valid = (r >= rh) & (r < h + rh) & (c >= rw) & (c < w + rw)

    ym = jnp.where(valid, acc, 0.0)
    y_ref[0] = ym.astype(y_ref.dtype)
    sum_ref[0, 0] = jnp.sum(ym, axis=0, keepdims=True)
    sq_ref[0, 0] = jnp.sum(ym * ym, axis=0, keepdims=True)


def _inorm_relu_kernel(y_ref, mu_ref, inv_ref, o_ref):
    """Pass 2: elementwise (y - mean) * inv_std, then ReLU (f32 math)."""
    y = y_ref[0].astype(jnp.float32)                      # (tile, 4*Cout)
    o_ref[0] = jnp.maximum((y - mu_ref[0]) * inv_ref[0], 0.0).astype(o_ref.dtype)


def upsample_pallas(x_nchw, weight, bias=None, *, use_bf16=False, tile_rows=512):
    """ConvTranspose2d(k=4, s=2, p=1) + InstanceNorm2d + ReLU.

    x_nchw: (N, Cin, H, W) f32
    weight: (Cin, Cout, 4, 4) f32  (PyTorch ConvTranspose2d layout)
    bias:   (Cout,) f32 — accepted for API parity but dropped: InstanceNorm2d
            (affine=False) cancels any per-channel constant exactly.
    returns (N, Cout, 2H, 2W) f32
    """
    del bias
    n, cin, h, w = x_nchw.shape
    cout = weight.shape[1]
    hout, wout = STRIDE * h, STRIDE * w
    wp2 = w + 2

    # --- row-tiling geometry over the flat (r, c) = (H+1, W+2) output grid ---
    rows_need = (h + 1) * wp2                 # rows holding every valid output
    tile = max(8, min(tile_rows, _round_up(rows_need, 8)))
    rows_p = _round_up(rows_need, tile)
    n_tiles = rows_p // tile
    rows_in = rows_p + wp2 + 1                # keeps every tap read in-bounds

    # --- inputs: NCHW -> NHWC, zero-pad 1, flatten spatial to lane-dense rows --
    x = jnp.transpose(x_nchw, (0, 2, 3, 1))
    xp = jnp.pad(x, ((0, 0), (1, 1), (1, 1), (0, 0)))
    xf = xp.reshape(n, (h + 2) * wp2, cin)
    xf = jnp.pad(xf, ((0, 0), (0, rows_in - (h + 2) * wp2), (0, 0)))

    # --- fold the 2x2 sub-pixel taps of all four phases into one weight slab --
    # w_all[2*dh+dw, i, (2*rh+rw)*cout + o] = W[i, o, 3-rh-2*dh, 3-rw-2*dw]
    taps = []
    for dh in range(2):
        for dw in range(2):
            cols = [weight[:, :, 3 - rh - 2 * dh, 3 - rw - 2 * dw]
                    for rh in range(2) for rw in range(2)]
            taps.append(jnp.concatenate(cols, axis=1))    # (Cin, 4*Cout)
    w_all = jnp.stack(taps, axis=0)                       # (4, Cin, 4*Cout)

    cdt = jnp.bfloat16 if use_bf16 else jnp.float32
    xf = xf.astype(cdt)
    w_all = w_all.astype(cdt)

    # --- tiny index tables (avoid in-kernel vector div/mod) --------------------
    jj = jnp.arange(rows_p, dtype=jnp.int32)
    rc = jnp.stack([jj // wp2, jj % wp2], axis=1)          # (rows_p, 2)
    ph = jnp.repeat(jnp.array([[0, 0, 1, 1], [0, 1, 0, 1]], jnp.int32),
                    cout, axis=1)                          # (2, 4*Cout)

    kern1 = partial(_convt_phase_kernel, h=h, w=w, cout=cout, tile=tile)
    y2d, sums, sqs = pl.pallas_call(
        kern1,
        out_shape=(
            jax.ShapeDtypeStruct((n, rows_p, 4 * cout), cdt),
            jax.ShapeDtypeStruct((n, n_tiles, 1, 4 * cout), jnp.float32),
            jax.ShapeDtypeStruct((n, n_tiles, 1, 4 * cout), jnp.float32),
        ),
        grid_spec=pltpu.PrefetchScalarGridSpec(
            num_scalar_prefetch=0,
            grid=(n, n_tiles),
            in_specs=[
                pl.BlockSpec((1, rows_in, cin), lambda b, t: (b, 0, 0)),
                pl.BlockSpec((4, cin, 4 * cout), lambda b, t: (0, 0, 0)),
                pl.BlockSpec((tile, 2), lambda b, t: (t, 0)),
                pl.BlockSpec((2, 4 * cout), lambda b, t: (0, 0)),
            ],
            out_specs=[
                pl.BlockSpec((1, tile, 4 * cout), lambda b, t: (b, t, 0)),
                pl.BlockSpec((1, 1, 1, 4 * cout), lambda b, t: (b, t, 0, 0)),
                pl.BlockSpec((1, 1, 1, 4 * cout), lambda b, t: (b, t, 0, 0)),
            ]),
        compiler_params=pltpu.CompilerParams(
            dimension_semantics=("parallel", "parallel")),
    )(xf, w_all, rc, ph)

    # --- fold tile/phase partials -> per-(image, channel) mean & inv-std (JAX) -
    cnt = float(hout * wout)
    sum_c = jnp.sum(sums[:, :, 0, :], axis=1).reshape(n, 4, cout).sum(axis=1)
    sq_c = jnp.sum(sqs[:, :, 0, :], axis=1).reshape(n, 4, cout).sum(axis=1)
    mean = sum_c / cnt
    var = sq_c / cnt - mean * mean
    inv = lax.rsqrt(var + EPS)
    mu_t = jnp.tile(mean, (1, 4)).reshape(n, 1, 4 * cout)   # phase-major lanes
    inv_t = jnp.tile(inv, (1, 4)).reshape(n, 1, 4 * cout)

    out2d = pl.pallas_call(
        _inorm_relu_kernel,
        out_shape=jax.ShapeDtypeStruct((n, rows_p, 4 * cout), jnp.float32),
        grid_spec=pltpu.PrefetchScalarGridSpec(
            num_scalar_prefetch=0,
            grid=(n, n_tiles),
            in_specs=[
                pl.BlockSpec((1, tile, 4 * cout), lambda b, t: (b, t, 0)),
                pl.BlockSpec((1, 1, 4 * cout), lambda b, t: (b, 0, 0)),
                pl.BlockSpec((1, 1, 4 * cout), lambda b, t: (b, 0, 0)),
            ],
            out_specs=pl.BlockSpec((1, tile, 4 * cout), lambda b, t: (b, t, 0))),
        compiler_params=pltpu.CompilerParams(
            dimension_semantics=("parallel", "parallel")),
    )(y2d, mu_t, inv_t)

    # --- de-interleave the 4 phases and emit NCHW (single fused XLA gather) ----
    y3 = out2d[:, :(h + 1) * wp2, :].reshape(n, h + 1, wp2, 4, cout)
    blocks = [y3[:, rh:h + rh, rw:w + rw, 2 * rh + rw, :]
              for rh in range(2) for rw in range(2)]
    st = jnp.stack(blocks, axis=3).reshape(n, h, w, 2, 2, cout)
    return st.transpose(0, 5, 1, 3, 2, 4).reshape(n, cout, hout, wout)


def upsample_reference(x_nchw, weight, bias):
    """Pure-JAX reference (transposed conv via lhs-dilated conv)."""
    wt = jnp.transpose(weight, (1, 0, 2, 3))[:, :, ::-1, ::-1]   # OIHW, flipped
    e = K - 1 - PAD
    y = lax.conv_general_dilated(
        x_nchw, wt, window_strides=(1, 1),
        padding=[(e, e), (e, e)], lhs_dilation=(STRIDE, STRIDE),
        dimension_numbers=("NCHW", "OIHW", "NCHW"))
    y = y + bias[None, :, None, None]
    mean = jnp.mean(y, axis=(2, 3), keepdims=True)
    var = jnp.mean((y - mean) ** 2, axis=(2, 3), keepdims=True)
    y = (y - mean) * lax.rsqrt(var + EPS)
    return jnp.maximum(y, 0.0)


if __name__ == "__main__":
    N, CIN, COUT, H, W = 2, 4, 8, 16, 16

    key = jax.random.PRNGKey(0)
    kx, kw, kb = jax.random.split(key, 3)
    x = jax.random.normal(kx, (N, CIN, H, W), jnp.float32)

    # Deterministic synthetic parameters (shapes per nn.ConvTranspose2d).
    bound = 1.0 / float(CIN * K * K) ** 0.5
    weight = jax.random.uniform(kw, (CIN, COUT, K, K), jnp.float32, -bound, bound)
    bias = jax.random.uniform(kb, (COUT,), jnp.float32, -bound, bound)

    out = jax.block_until_ready(upsample_pallas(x, weight, bias))
    ref = upsample_reference(x, weight, bias)

    assert out.shape == (N, COUT, 2 * H, 2 * W), out.shape
    assert jnp.allclose(out, ref, atol=1e-4, rtol=1e-4), (
        float(jnp.max(jnp.abs(out - ref))))

    # bf16 fast path (bf16 DMA/MXU, f32 stats) — sanity check at loose tolerance.
    out_bf = jax.block_until_ready(upsample_pallas(x, weight, bias, use_bf16=True))
    assert float(jnp.max(jnp.abs(out_bf - ref))) < 0.25

    print("KERNEL_OK")
</pallas_src>

<mosaic_0001>
module attributes {stable_mosaic.version = 11 : i64} {
  func.func @_convt_phase_kernel(%arg0: i32, %arg1: i32, %arg2: memref<1x331x4xf32, #tpu.memory_space<vmem>>, %arg3: memref<4x4x32xf32, #tpu.memory_space<vmem>>, %arg4: memref<312x2xi32, #tpu.memory_space<vmem>>, %arg5: memref<2x32xi32, #tpu.memory_space<vmem>>, %arg6: memref<1x312x32xf32, #tpu.memory_space<vmem>>, %arg7: memref<1x1x1x32xf32, #tpu.memory_space<vmem>>, %arg8: memref<1x1x1x32xf32, #tpu.memory_space<vmem>>) attributes {dimension_semantics = [#tpu.dimension_semantics<parallel>, #tpu.dimension_semantics<parallel>], iteration_bounds = array<i64: 2, 1>, scalar_prefetch = 0 : i64, scratch_operands = 0 : i64, tpu.core_type = #tpu.core_type<tc>, window_params = [{transform_indices = @transform_0, window_bounds = array<i64: 1, 331, 4>}, {pipeline_mode = #tpu.pipeline_mode<synchronous>, transform_indices = @transform_1, window_bounds = array<i64: 4, 4, 32>}, {transform_indices = @transform_2, window_bounds = array<i64: 312, 2>}, {pipeline_mode = #tpu.pipeline_mode<synchronous>, transform_indices = @transform_3, window_bounds = array<i64: 2, 32>}, {transform_indices = @transform_4, window_bounds = array<i64: 1, 312, 32>}, {transform_indices = @transform_5, window_bounds = array<i64: 1, 1, 1, 32>}, {transform_indices = @transform_6, window_bounds = array<i64: 1, 1, 1, 32>}]} {
    %c312_i32 = arith.constant 312 : i32
    %0 = arith.muli %arg1, %c312_i32 : i32
    %1 = tpu.assume_multiple %0, 8 : i32
    %c0_i32 = arith.constant 0 : i32
    %2 = arith.addi %1, %c0_i32 : i32
    %c0_i32_0 = arith.constant 0 : i32
    %3 = arith.addi %2, %c0_i32_0 : i32
    %c0 = arith.constant 0 : index
    %4 = arith.index_cast %3 : i32 to index
    %c0_1 = arith.constant 0 : index
    %5 = vector.load %arg2[%c0, %4, %c0_1] : memref<1x331x4xf32, #tpu.memory_space<vmem>>, vector<1x312x4xf32>
    %6 = vector.shape_cast %5 : vector<1x312x4xf32> to vector<312x4xf32>
    %c0_2 = arith.constant 0 : index
    %c0_3 = arith.constant 0 : index
    %c0_4 = arith.constant 0 : index
    %7 = vector.load %arg3[%c0_2, %c0_3, %c0_4] : memref<4x4x32xf32, #tpu.memory_space<vmem>>, vector<1x4x32xf32>
    %8 = vector.shape_cast %7 : vector<1x4x32xf32> to vector<4x32xf32>
    %cst = arith.constant dense<0.000000e+00> : vector<312x32xf32>
    %9 = tpu.matmul %6, %8, %cst {dimension_numbers = #tpu.dot_dimension_numbers<[1], [0], [0], [1], [0, 0, 1, 1], [], []>} : vector<312x4xf32>, vector<4x32xf32>, vector<312x32xf32> -> vector<312x32xf32>
    %c0_i32_5 = arith.constant 0 : i32
    %10 = arith.addi %1, %c0_i32_5 : i32
    %c1_i32 = arith.constant 1 : i32
    %11 = arith.addi %10, %c1_i32 : i32
    %c0_6 = arith.constant 0 : index
    %12 = arith.index_cast %11 : i32 to index
    %c0_7 = arith.constant 0 : index
    %13 = vector.load %arg2[%c0_6, %12, %c0_7] : memref<1x331x4xf32, #tpu.memory_space<vmem>>, vector<1x312x4xf32>
    %14 = vector.shape_cast %13 : vector<1x312x4xf32> to vector<312x4xf32>
    %c1 = arith.constant 1 : index
    %c0_8 = arith.constant 0 : index
    %c0_9 = arith.constant 0 : index
    %15 = vector.load %arg3[%c1, %c0_8, %c0_9] : memref<4x4x32xf32, #tpu.memory_space<vmem>>, vector<1x4x32xf32>
    %16 = vector.shape_cast %15 : vector<1x4x32xf32> to vector<4x32xf32>
    %cst_10 = arith.constant dense<0.000000e+00> : vector<312x32xf32>
    %17 = tpu.matmul %14, %16, %cst_10 {dimension_numbers = #tpu.dot_dimension_numbers<[1], [0], [0], [1], [0, 0, 1, 1], [], []>} : vector<312x4xf32>, vector<4x32xf32>, vector<312x32xf32> -> vector<312x32xf32>
    %18 = arith.addf %9, %17 : vector<312x32xf32>
    %c18_i32 = arith.constant 18 : i32
    %19 = arith.addi %1, %c18_i32 : i32
    %c0_i32_11 = arith.constant 0 : i32
    %20 = arith.addi %19, %c0_i32_11 : i32
    %c0_12 = arith.constant 0 : index
    %21 = arith.index_cast %20 : i32 to index
    %c0_13 = arith.constant 0 : index
    %22 = vector.load %arg2[%c0_12, %21, %c0_13] : memref<1x331x4xf32, #tpu.memory_space<vmem>>, vector<1x312x4xf32>
    %23 = vector.shape_cast %22 : vector<1x312x4xf32> to vector<312x4xf32>
    %c2 = arith.constant 2 : index
    %c0_14 = arith.constant 0 : index
    %c0_15 = arith.constant 0 : index
    %24 = vector.load %arg3[%c2, %c0_14, %c0_15] : memref<4x4x32xf32, #tpu.memory_space<vmem>>, vector<1x4x32xf32>
    %25 = vector.shape_cast %24 : vector<1x4x32xf32> to vector<4x32xf32>
    %cst_16 = arith.constant dense<0.000000e+00> : vector<312x32xf32>
    %26 = tpu.matmul %23, %25, %cst_16 {dimension_numbers = #tpu.dot_dimension_numbers<[1], [0], [0], [1], [0, 0, 1, 1], [], []>} : vector<312x4xf32>, vector<4x32xf32>, vector<312x32xf32> -> vector<312x32xf32>
    %27 = arith.addf %18, %26 : vector<312x32xf32>
    %c18_i32_17 = arith.constant 18 : i32
    %28 = arith.addi %1, %c18_i32_17 : i32
    %c1_i32_18 = arith.constant 1 : i32
    %29 = arith.addi %28, %c1_i32_18 : i32
    %c0_19 = arith.constant 0 : index
    %30 = arith.index_cast %29 : i32 to index
    %c0_20 = arith.constant 0 : index
    %31 = vector.load %arg2[%c0_19, %30, %c0_20] : memref<1x331x4xf32, #tpu.memory_space<vmem>>, vector<1x312x4xf32>
    %32 = vector.shape_cast %31 : vector<1x312x4xf32> to vector<312x4xf32>
    %c3 = arith.constant 3 : index
    %c0_21 = arith.constant 0 : index
    %c0_22 = arith.constant 0 : index
    %33 = vector.load %arg3[%c3, %c0_21, %c0_22] : memref<4x4x32xf32, #tpu.memory_space<vmem>>, vector<1x4x32xf32>
    %34 = vector.shape_cast %33 : vector<1x4x32xf32> to vector<4x32xf32>
    %cst_23 = arith.constant dense<0.000000e+00> : vector<312x32xf32>
    %35 = tpu.matmul %32, %34, %cst_23 {dimension_numbers = #tpu.dot_dimension_numbers<[1], [0], [0], [1], [0, 0, 1, 1], [], []>} : vector<312x4xf32>, vector<4x32xf32>, vector<312x32xf32> -> vector<312x32xf32>
    %36 = arith.addf %27, %35 : vector<312x32xf32>
    %c0_24 = arith.constant 0 : index
    %c0_25 = arith.constant 0 : index
    %37 = vector.load %arg4[%c0_24, %c0_25] : memref<312x2xi32, #tpu.memory_space<vmem>>, vector<312x2xi32>
    %38 = vector.extract_strided_slice %37 {offsets = [0, 0], sizes = [312, 1], strides = [1, 1]} : vector<312x2xi32> to vector<312x1xi32>
    %39 = vector.extract_strided_slice %37 {offsets = [0, 1], sizes = [312, 1], strides = [1, 1]} : vector<312x2xi32> to vector<312x1xi32>
    %c0_26 = arith.constant 0 : index
    %c0_27 = arith.constant 0 : index
    %40 = vector.load %arg5[%c0_26, %c0_27] : memref<2x32xi32, #tpu.memory_space<vmem>>, vector<1x32xi32>
    %c1_28 = arith.constant 1 : index
    %c0_29 = arith.constant 0 : index
    %41 = vector.load %arg5[%c1_28, %c0_29] : memref<2x32xi32, #tpu.memory_space<vmem>>, vector<1x32xi32>
    %42 = vector.broadcast %38 : vector<312x1xi32> to vector<312x32xi32>
    %43 = vector.broadcast %40 : vector<1x32xi32> to vector<312x32xi32>
    %44 = arith.cmpi sge, %42, %43 : vector<312x32xi32>
    %c16_i32 = arith.constant 16 : i32
    %45 = vector.broadcast %c16_i32 : i32 to vector<1x32xi32>
    %46 = arith.addi %45, %40 : vector<1x32xi32>
    %47 = vector.broadcast %38 : vector<312x1xi32> to vector<312x32xi32>
    %48 = vector.broadcast %46 : vector<1x32xi32> to vector<312x32xi32>
    %49 = arith.cmpi slt, %47, %48 : vector<312x32xi32>
    %50 = arith.andi %44, %49 : vector<312x32xi1>
    %51 = vector.broadcast %39 : vector<312x1xi32> to vector<312x32xi32>
    %52 = vector.broadcast %41 : vector<1x32xi32> to vector<312x32xi32>
    %53 = arith.cmpi sge, %51, %52 : vector<312x32xi32>
    %54 = arith.andi %50, %53 : vector<312x32xi1>
    %c16_i32_30 = arith.constant 16 : i32
    %55 = vector.broadcast %c16_i32_30 : i32 to vector<1x32xi32>
    %56 = arith.addi %55, %41 : vector<1x32xi32>
    %57 = vector.broadcast %39 : vector<312x1xi32> to vector<312x32xi32>
    %58 = vector.broadcast %56 : vector<1x32xi32> to vector<312x32xi32>
    %59 = arith.cmpi slt, %57, %58 : vector<312x32xi32>
    %60 = arith.andi %54, %59 : vector<312x32xi1>
    %cst_31 = arith.constant 0.000000e+00 : f32
    %61 = vector.broadcast %cst_31 : f32 to vector<312x32xf32>
    %62 = arith.select %60, %36, %61 : vector<312x32xi1>, vector<312x32xf32>
    %c0_32 = arith.constant 0 : index
    %c0_33 = arith.constant 0 : index
    %c0_34 = arith.constant 0 : index
    %63 = vector.load %arg6[%c0_32, %c0_33, %c0_34] : memref<1x312x32xf32, #tpu.memory_space<vmem>>, vector<1x312x32xf32>
    %64 = vector.shape_cast %63 : vector<1x312x32xf32> to vector<312x32xf32>
    %65 = vector.shape_cast %62 : vector<312x32xf32> to vector<1x312x32xf32>
    tpu.vector_store %arg6[%c0_32, %c0_33, %c0_34], %65 {strides = array<i32>} : memref<1x312x32xf32, #tpu.memory_space<vmem>>, vector<1x312x32xf32>,
    %cst_35 = arith.constant dense<0.000000e+00> : vector<32xf32>
    %66 = vector.multi_reduction <add>, %62, %cst_35 [0] : vector<312x32xf32> to vector<32xf32>
    %67 = vector.shape_cast %66 : vector<32xf32> to vector<1x32xf32>
    %c0_36 = arith.constant 0 : index
    %c0_37 = arith.constant 0 : index
    %c0_38 = arith.constant 0 : index
    %c0_39 = arith.constant 0 : index
    %68 = vector.load %arg7[%c0_36, %c0_37, %c0_38, %c0_39] : memref<1x1x1x32xf32, #tpu.memory_space<vmem>>, vector<1x1x1x32xf32>
    %69 = vector.shape_cast %68 : vector<1x1x1x32xf32> to vector<1x32xf32>
    %70 = vector.shape_cast %67 : vector<1x32xf32> to vector<1x1x1x32xf32>
    tpu.vector_store %arg7[%c0_36, %c0_37, %c0_38, %c0_39], %70 {strides = array<i32>} : memref<1x1x1x32xf32, #tpu.memory_space<vmem>>, vector<1x1x1x32xf32>,
    %71 = arith.mulf %62, %62 : vector<312x32xf32>
    %cst_40 = arith.constant dense<0.000000e+00> : vector<32xf32>
    %72 = vector.multi_reduction <add>, %71, %cst_40 [0] : vector<312x32xf32> to vector<32xf32>
    %73 = vector.shape_cast %72 : vector<32xf32> to vector<1x32xf32>
    %c0_41 = arith.constant 0 : index
    %c0_42 = arith.constant 0 : index
    %c0_43 = arith.constant 0 : index
    %c0_44 = arith.constant 0 : index
    %74 = vector.load %arg8[%c0_41, %c0_42, %c0_43, %c0_44] : memref<1x1x1x32xf32, #tpu.memory_space<vmem>>, vector<1x1x1x32xf32>
    %75 = vector.shape_cast %74 : vector<1x1x1x32xf32> to vector<1x32xf32>
    %76 = vector.shape_cast %73 : vector<1x32xf32> to vector<1x1x1x32xf32>
    tpu.vector_store %arg8[%c0_41, %c0_42, %c0_43, %c0_44], %76 {strides = array<i32>} : memref<1x1x1x32xf32, #tpu.memory_space<vmem>>, vector<1x1x1x32xf32>,
    return
  }
  func.func @transform_0(%arg0: i32, %arg1: i32) -> (i32, i32, i32) {
    %c0_i32 = arith.constant 0 : i32
    %c0_i32_0 = arith.constant 0 : i32
    %c0_i32_1 = arith.constant 0 : i32
    return %arg0, %c0_i32, %c0_i32_0 : i32, i32, i32
  }
  func.func @transform_1(%arg0: i32, %arg1: i32) -> (i32, i32, i32) {
    %c0_i32 = arith.constant 0 : i32
    %c0_i32_0 = arith.constant 0 : i32
    %c0_i32_1 = arith.constant 0 : i32
    %c0_i32_2 = arith.constant 0 : i32
    return %c0_i32, %c0_i32_0, %c0_i32_1 : i32, i32, i32
  }
  func.func @transform_2(%arg0: i32, %arg1: i32) -> (i32, i32) {
    %c0_i32 = arith.constant 0 : i32
    %c0_i32_0 = arith.constant 0 : i32
    return %arg1, %c0_i32 : i32, i32
  }
  func.func @transform_3(%arg0: i32, %arg1: i32) -> (i32, i32) {
    %c0_i32 = arith.constant 0 : i32
    %c0_i32_0 = arith.constant 0 : i32
    %c0_i32_1 = arith.constant 0 : i32
    return %c0_i32, %c0_i32_0 : i32, i32
  }
  func.func @transform_4(%arg0: i32, %arg1: i32) -> (i32, i32, i32) {
    %c0_i32 = arith.constant 0 : i32
    %c0_i32_0 = arith.constant 0 : i32
    return %arg0, %arg1, %c0_i32 : i32, i32, i32
  }
  func.func @transform_5(%arg0: i32, %arg1: i32) -> (i32, i32, i32, i32) {
    %c0_i32 = arith.constant 0 : i32
    %c0_i32_0 = arith.constant 0 : i32
    %c0_i32_1 = arith.constant 0 : i32
    return %arg0, %arg1, %c0_i32, %c0_i32_0 : i32, i32, i32, i32
  }
  func.func @transform_6(%arg0: i32, %arg1: i32) -> (i32, i32, i32, i32) {
    %c0_i32 = arith.constant 0 : i32
    %c0_i32_0 = arith.constant 0 : i32
    %c0_i32_1 = arith.constant 0 : i32
    return %arg0, %arg1, %c0_i32, %c0_i32_0 : i32, i32, i32, i32
  }
}

</mosaic_0001>

<bundles_post_ra>
// kernel: tpu_custom_call.1
= control target key start
LH: loop header
LB: loop body
LE: loop exit
PB: predicated region body
PF: predicated region fallthrough
CT: control target
= control target key end

     0   :  { %12 = vsyncpa [#allocation3], 0  ;;  %s6549_s0 = inlined_call_operand.vmem [shape: f32[2,331,4], index: 0, kind: input, shape index: {}]   ;;  %s6550_s1 = inlined_call_operand.vmem [shape: f32[4,4,32], index: 1, kind: input, shape index: {}]   ;;  %s6551_s2 = inlined_call_operand.vmem [shape: s32[312,2], index: 2, kind: input, shape index: {}]   ;;  %s6552_s3 = inlined_call_operand.vmem [shape: s32[2,32], index: 3, kind: input, shape index: {}]   ;;  %s6553_s4 = inlined_call_operand.vmem [shape: f32[2,312,32], index: 4, kind: output, shape index: {0}]   ;;  %s6554_s5 = inlined_call_operand.hbm [shape: f32[2,1,1,32], index: 5, kind: output, shape index: {1}]   ;;  %s6555_s6 = inlined_call_operand.hbm [shape: f32[2,1,1,32], index: 6, kind: output, shape index: {2}]  }
   0x1   :  { %14 = vsyncpa [#allocation3 + $0x1], 0 }
   0x2   :  { %15 = vsyncpa [#allocation5], 0 }
   0x3   :  { %17 = vsyncpa [#allocation5 + $0x1], 0  ;;  %s4492_s21 = smov 0   ;;  %s4494_s22 = smov 0  }
   0x4   :  { %s4496_s23 = smov 0   ;;  %s4498_s24 = smov 0  }
   0x5   :  { %s4500_s25 = smov 0   ;;  %s4502_s26 = smov 0  }
   0x6 LB: > { %s3145_s27 = sadd.s32 4294967295, %s4449_s26   ;;  %s3146_s28 = sadd.s32 4294967294, %s4449_s26   ;;  %s4449_s26 = sphi %s4502_s26, %s23_s26   ;;  %s4445_s25 = sphi %s4500_s25, %s6704_s25   ;;  %s4441_s24 = sphi %s4498_s24, %s6703_s24   ;;  %s4437_s23 = sphi %s4496_s23, %s6702_s23   ;;  %s4433_s22 = sphi %s4494_s22, %s6701_s22   ;;  %s4429_s21 = sphi %s4492_s21, %s6700_s21  }
   0x7   : > { %s35_s29 = sadd.s32 1, %s4445_s25  ;;  %s166_s30 = sadd.s32 1, %s4437_s23 }
   0x8   : > { %p37_p0 = scmp.ge.s32.totalorder %s35_s29, 2  ;;  %p176_p1 = scmp.ne.s32.totalorder %s4437_s23, %s4433_s22 }
   0x9   : > { %p177_p2 = scmp.eq.s32.totalorder %s3145_s27, 1  ;;  %p182_p3 = scmp.ne.s32.totalorder %s4433_s22, %s4429_s21 }
   0xa   : > { %s6706_s29 = smov (%p37_p0, %s35_s29), 0  ;;  %p183_p5 = scmp.eq.s32.totalorder %s3146_s28, 1 }
   0xb   : > { %p4532_p4 = por %p177_p2, %p176_p1  ;;  %s161_s8 = ssub.s32 %s4445_s25, %s6706_s29 }
   0xc   : > { %p3150_p6 = scmp.ge.s32.totalorder %s4449_s26, 1  ;;  %p164_p7 = scmp.eq.s32.totalorder %s161_s8, 0 }
   0xd   : > { %p4539_p8 = por %p183_p5, %p182_p3  ;;  %p252_p9 = scmp.lt.s32.totalorder %s4449_s26, 3 }
   0xe   : > { %s4545_s10 = scalar_select %p164_p7, %s4437_s23, %s166_s30  }
   0xf   : > { %p253_p10 = pnand %p3150_p6, %p252_p9 }
  0x10   : > { %v3192_v0 = vld [vmem:[%s6550_s1 + $0x4] sm:$0xf] (!%p253_p10)  ;;  %vm523_vm0 = vcmask (!%p253_p10), 1043456   ;;  %v3312_v1 = vld [vmem:[%s6550_s1 + $0x8] sm:$0xf] (!%p253_p10)  ;;  %v4451_v2 = vmov (!%p253_p10), 0.0  }
  0x11   : > { %256 = sbr.rel (%p253_p10) target bundleno = 605 (0x25d), region = 36  ;;  %3597 = vmatprep.subr.mxu1 (!%p253_p10), %v4451_v2  ;;  %3835 = vmatprep.subr.mxu0 (!%p253_p10), %v4451_v2  ;;  %p299_p11 = scmp.lt.s32.totalorder (!%p253_p10), %s4441_s24, 1  ;;  %vm4452_vm1 = vmmov (!%p253_p10), 0   ;;  %v4567_v3 = vld [vmem:[%s6551_s2] sm:$0xff] (!%p253_p10)  ;;  %v4572_v4 = vld [vmem:[%s6551_s2 + $0x10] sm:$0xff] (!%p253_p10)  ;;  %v4453_v5 = vmov (!%p253_p10), 0  }
  0x12   : > { %3598 = vmatpush3.msk.msra.mxu1 (!%p253_p10), %vm523_vm0, %v3192_v0  ;;  %3836 = vmatpush3.msk.msra.mxu0 (!%p253_p10), %vm523_vm0, %v3312_v1  ;;  %vm405_vm2 = vcmask (!%p253_p10), 31744   ;;  %v361_v6 = vld [vmem:[%s6550_s1] sm:$0xf] (!%p253_p10)  ;;  %v3392_v7 = vld [vmem:[%s6550_s1 + $0xc] sm:$0xf] (!%p253_p10)  ;;  %v4605_v11 = vld [vmem:[%s6551_s2 + $0x18] sm:$0xff] (!%p253_p10) }
  0x13   : > { %3599 = vmatprep.mubr.msk.f32.mxu1 (!%p253_p10), %vm4452_vm1, %v4451_v2  ;;  %3716 = vmatprep.subr.mxu1 (!%p253_p10), %v4451_v2  ;;  %v4600_v10 = vld [vmem:[%s6551_s2 + $0x8] sm:$0xff] (!%p253_p10)  ;;  %v4622_v14 = vld [vmem:[%s6551_s2 + $0x20] sm:$0xff] (!%p253_p10)  ;;  %v4642_v18 = vld [vmem:[%s6551_s2 + $0x30] sm:$0xff] (!%p253_p10)  ;;  %s3433_s11 = sshll.u32 (!%p253_p10), %s4441_s24, 4 }
  0x14   : > { %3837 = vmatprep.mubr.msk.f32.mxu0 (!%p253_p10), %vm4452_vm1, %v4451_v2  ;;  %3954 = vmatprep.subr.mxu0 (!%p253_p10), %v4451_v2  ;;  %v4627_v15 = vld [vmem:[%s6551_s2 + $0x28] sm:$0xff] (!%p253_p10)  ;;  %v4647_v19 = vld [vmem:[%s6551_s2 + $0x38] sm:$0xff] (!%p253_p10)  ;;  %v4662_v22 = vld [vmem:[%s6551_s2 + $0x40] sm:$0xff] (!%p253_p10)  ;;  %s6468_s18 = scalar_lea.hbm (!%p253_p10), %s6554_s5, %s3433_s11 }
  0x15   : > { %4334 = vset.pattern.permute.xlu0 (!%p253_p10), %v4453_v5  ;;  %4335 = vset.pattern.permute.xlu1 (!%p253_p10), %v4453_v5  ;;  %v4667_v23 = vld [vmem:[%s6551_s2 + $0x48] sm:$0xff] (!%p253_p10)  ;;  %v4682_v26 = vld [vmem:[%s6551_s2 + $0x50] sm:$0xff] (!%p253_p10)  ;;  %v4687_v27 = vld [vmem:[%s6551_s2 + $0x58] sm:$0xff] (!%p253_p10) }
  0x16   : > { %2133 = vperm.xlu0 (!%p253_p10), %4334, %v4567_v3   ;;  %2139 = vperm.xlu1 (!%p253_p10), %4335, %v4572_v4   ;;  %v4702_v30 = vld [vmem:[%s6551_s2 + $0x60] sm:$0xff] (!%p253_p10)  ;;  %v4707_v31 = vld [vmem:[%s6551_s2 + $0x68] sm:$0xff] (!%p253_p10)  ;;  %v4722_v34 = vld [vmem:[%s6551_s2 + $0x70] sm:$0xff] (!%p253_p10) }
  0x17   : > { %v4727_v35 = vld [vmem:[%s6551_s2 + $0x78] sm:$0xff] (!%p253_p10)  ;;  %v4742_v38 = vld [vmem:[%s6551_s2 + $0x80] sm:$0xff] (!%p253_p10)  ;;  %v4747_v39 = vld [vmem:[%s6551_s2 + $0x88] sm:$0xff] (!%p253_p10) }
  0x18   : > { %s4562_s15 = scalar_select %p299_p11, %s4441_s24, 1  ;;  %v4762_v42 = vld [vmem:[%s6551_s2 + $0x90] sm:$0xff]  ;;  %v4767_v43 = vld [vmem:[%s6551_s2 + $0x98] sm:$0xff]  ;;  %v4782_v46 = vld [vmem:[%s6551_s2 + $0xa0] sm:$0xff] }
  0x19   : > { %v4787_v47 = vld [vmem:[%s6551_s2 + $0xa8] sm:$0xff]  ;;  %v4802_v50 = vld [vmem:[%s6551_s2 + $0xb0] sm:$0xff]  ;;  %v4807_v51 = vld [vmem:[%s6551_s2 + $0xb8] sm:$0xff] }
  0x1a   : > { %s4268_s20 = smul.u32 336, %s4562_s15  ;;  %2136 = vperm.xlu0 %4334, %v4600_v10   ;;  %2142 = vperm.xlu1 %4335, %v4605_v11   ;;  %v4822_v54 = vld [vmem:[%s6551_s2 + $0xc0] sm:$0xff]  ;;  %v4827_v55 = vld [vmem:[%s6551_s2 + $0xc8] sm:$0xff]  ;;  %v4842_v58 = vld [vmem:[%s6551_s2 + $0xd0] sm:$0xff] }
  0x1b   : > { %v4847_v59 = vld [vmem:[%s6551_s2 + $0xd8] sm:$0xff]  ;;  %v4862_v62 = vld [vmem:[%s6551_s2 + $0xe0] sm:$0xff]  ;;  %v4867_v63 = vld [vmem:[%s6551_s2 + $0xe8] sm:$0xff] }
  0x1c   : > { %s4585_s30 = scalar_lea.vmem %s6549_s0, %s4268_s20  ;;  %s4269_s20 = smul.u32 312, %s4562_s15 }
  0x1d   : > { %v3153_v8 = vld [vmem:[%s4585_s30 + $0x1] sm:$0xff]  ;;  %v3273_v9 = vld [vmem:[%s4585_s30 + $0x12] sm:$0xff]  ;;  %v3154_v12 = vld [vmem:[%s4585_s30 + $0x9] sm:$0xff]  ;;  %s6458_s15 = sand.u32 1, %s4433_s22  }
  0x1e   : > { %3600 = vmatmul.mubr.msk.f32.vlgmr.msra.gmra.mrb[0].mxu1 %vm405_vm2, %v3153_v8  ;;  %3838 = vmatmul.mubr.msk.f32.vlgmr.msra.gmra.mrb[0].mxu0 %vm405_vm2, %v3273_v9  ;;  %v3274_v13 = vld [vmem:[%s4585_s30 + $0x1a] sm:$0xff]  ;;  %v3155_v16 = vld [vmem:[%s4585_s30 + $0x11] sm:$0xff]  ;;  %v3275_v17 = vld [vmem:[%s4585_s30 + $0x22] sm:$0xff]  ;;  %s5582_s8 = scalar_lea.vmem %s6553_s4, %s4269_s20  ;;  %s292_s12 = scalar_lea.vmem [#allocation2], %s6458_s15 }
  0x1f   : > { %3717 = vmatpush3.msk.msra.mxu1 %vm523_vm0, %v361_v6  ;;  %3955 = vmatpush3.msk.msra.mxu0 %vm523_vm0, %v3392_v7  ;;  %v3156_v20 = vld [vmem:[%s4585_s30 + $0x19] sm:$0xff]  ;;  %v3276_v21 = vld [vmem:[%s4585_s30 + $0x2a] sm:$0xff]  ;;  %v3157_v24 = vld [vmem:[%s4585_s30 + $0x21] sm:$0xff]  ;;  %vm2696_vm0 = vcmask 261120   ;;  %s2975_s13 = sshll.u32 %s292_s12, 4  ;;  %s298_s14 = scalar_lea.vmem [#allocation4], %s6458_s15  ;;  %s6470_s13 = int_to_ptr.vmem [resolvable:$true] %s2975_s13 }
  0x20   : > { %3602 = vmatprep.mubr.msk.f32.mxu1 %vm4452_vm1, %v4451_v2  ;;  %3840 = vmatprep.mubr.msk.f32.mxu0 %vm4452_vm1, %v4451_v2  ;;  %v3277_v25 = vld [vmem:[%s4585_s30 + $0x32] sm:$0xff]  ;;  %v3158_v28 = vld [vmem:[%s4585_s30 + $0x29] sm:$0xff]  ;;  %v3278_v29 = vld [vmem:[%s4585_s30 + $0x3a] sm:$0xff]  ;;  %s2989_s16 = sshll.u32 %s298_s14, 4  ;;  %s6476_s20 = scalar_lea.hbm %s6555_s6, %s3433_s11  ;;  %s6478_s16 = int_to_ptr.vmem [resolvable:$true] %s2989_s16 }
  0x21   : > { %2145 = vperm.xlu0 %4334, %v4622_v14   ;;  %2148 = vperm.xlu1 %4335, %v4627_v15   ;;  %v3159_v32 = vld [vmem:[%s4585_s30 + $0x31] sm:$0xff]  ;;  %v3279_v33 = vld [vmem:[%s4585_s30 + $0x42] sm:$0xff]  ;;  %v3160_v36 = vld [vmem:[%s4585_s30 + $0x39] sm:$0xff]  ;;  %s2954_s27 = scalar_lea.sflag [#allocation3], %s6458_s15  ;;  %s4339_s28 = scalar_lea.vmem %s6470_s13, 16 }
  0x22   : > { %3603 = vmatmul.mubr.msk.f32.gmra.mrb[2].mxu1 %vm405_vm2, %v3154_v12  ;;  %3841 = vmatmul.mubr.msk.f32.gmra.mrb[2].mxu0 %vm405_vm2, %v3274_v13  ;;  %v3280_v37 = vld [vmem:[%s4585_s30 + $0x4a] sm:$0xff]  ;;  %v3161_v40 = vld [vmem:[%s4585_s30 + $0x41] sm:$0xff]  ;;  %v3281_v41 = vld [vmem:[%s4585_s30 + $0x52] sm:$0xff]  ;;  %p4340_p12 = scmp.ne.s32.totalorder %s6470_s13, %s4339_s28 }
  0x23   : > { %3605 = vmatprep.mubr.msk.f32.mxu1 %vm4452_vm1, %v4451_v2  ;;  %3843 = vmatprep.mubr.msk.f32.mxu0 %vm4452_vm1, %v4451_v2  ;;  %v3162_v44 = vld [vmem:[%s4585_s30 + $0x49] sm:$0xff]  ;;  %v3282_v45 = vld [vmem:[%s4585_s30 + $0x5a] sm:$0xff]  ;;  %v3163_v48 = vld [vmem:[%s4585_s30 + $0x51] sm:$0xff] }
  0x24   : > { %v3283_v49 = vld [vmem:[%s4585_s30 + $0x62] sm:$0xff]  ;;  %v3164_v52 = vld [vmem:[%s4585_s30 + $0x59] sm:$0xff]  ;;  %v3284_v53 = vld [vmem:[%s4585_s30 + $0x6a] sm:$0xff]  ;;  %p4341_p13 = pnand %p4340_p12, %p4532_p4 }
  0x25   : > { %2151 = vperm.xlu0 %4334, %v4642_v18   ;;  %2154 = vperm.xlu1 %4335, %v4647_v19   ;;  %v3165_v56 = vld [vmem:[%s4585_s30 + $0x61] sm:$0xff]  ;;  %v3285_v57 = vld [vmem:[%s4585_s30 + $0x72] sm:$0xff]  ;;  %v3166_v60 = vld [vmem:[%s4585_s30 + $0x69] sm:$0xff] }
  0x26   : > { %3606 = vmatmul.mubr.msk.f32.gmra.mrb[4].mxu1 %vm405_vm2, %v3155_v16  ;;  %3844 = vmatmul.mubr.msk.f32.gmra.mrb[4].mxu0 %vm405_vm2, %v3275_v17  ;;  %v3286_v61 = vld [vmem:[%s4585_s30 + $0x7a] sm:$0xff]  ;;  %v3167_v0 = vld [vmem:[%s4585_s30 + $0x71] sm:$0xff]  ;;  %v3287_v1 = vld [vmem:[%s4585_s30 + $0x82] sm:$0xff]  ;;  %p4342_p0 = pneg %p4341_p13 }
  0x27   : > { %3608 = vmatprep.mubr.msk.f32.mxu1 %vm4452_vm1, %v4451_v2  ;;  %3846 = vmatprep.mubr.msk.f32.mxu0 %vm4452_vm1, %v4451_v2  ;;  %v4882_v6 = vld [vmem:[%s6551_s2 + $0xf0] sm:$0xff]  ;;  %v4887_v7 = vld [vmem:[%s6551_s2 + $0xf8] sm:$0xff]  ;;  %v4902_v12 = vld [vmem:[%s6551_s2 + $0x100] sm:$0xff] }
  0x28   : > { %v3168_v8 = vld [vmem:[%s4585_s30 + $0x79] sm:$0xff]  ;;  %v3288_v9 = vld [vmem:[%s4585_s30 + $0x8a] sm:$0xff]  ;;  %v3169_v16 = vld [vmem:[%s4585_s30 + $0x81] sm:$0xff] }
  0x29   : > { %2157 = vperm.xlu0 %4334, %v4662_v22   ;;  %2160 = vperm.xlu1 %4335, %v4667_v23   ;;  %v4907_v13 = vld [vmem:[%s6551_s2 + $0x108] sm:$0xff]  ;;  %v3289_v17 = vld [vmem:[%s4585_s30 + $0x92] sm:$0xff] }
  0x2a   : > { %3609 = vmatmul.mubr.msk.f32.gmra.mrb[6].mxu1 %vm405_vm2, %v3156_v20  ;;  %3847 = vmatmul.mubr.msk.f32.gmra.mrb[6].mxu0 %vm405_vm2, %v3276_v21  ;;  %v4922_v20 = vld [vmem:[%s6551_s2 + $0x110] sm:$0xff]  ;;  %v4927_v21 = vld [vmem:[%s6551_s2 + $0x118] sm:$0xff] }
  0x2b   : > { %3611 = vmatprep.mubr.msk.f32.mxu1 %vm4452_vm1, %v4451_v2  ;;  %3849 = vmatprep.mubr.msk.f32.mxu0 %vm4452_vm1, %v4451_v2 }
  0x2d   : > { %2163 = vperm.xlu0 %4334, %v4682_v26   ;;  %2166 = vperm.xlu1 %4335, %v4687_v27  }
  0x2e   : > { %3612 = vmatmul.mubr.msk.f32.gmra.mrb[8].mxu1 %vm405_vm2, %v3157_v24  ;;  %3850 = vmatmul.mubr.msk.f32.gmra.mrb[8].mxu0 %vm405_vm2, %v3277_v25  ;;  %v3170_v24 = vld [vmem:[%s4585_s30 + $0x89] sm:$0xff]  ;;  %v3290_v25 = vld [vmem:[%s4585_s30 + $0x9a] sm:$0xff] }
  0x2f   : > { %3614 = vmatprep.mubr.msk.f32.mxu1 %vm4452_vm1, %v4451_v2  ;;  %3852 = vmatprep.mubr.msk.f32.mxu0 %vm4452_vm1, %v4451_v2 }
  0x31   : > { %2169 = vperm.xlu0 %4334, %v4702_v30   ;;  %2172 = vperm.xlu1 %4335, %v4707_v31  }
  0x32   : > { %3615 = vmatmul.mubr.msk.f32.gmra.mrb[10].mxu1 %vm405_vm2, %v3158_v28  ;;  %3853 = vmatmul.mubr.msk.f32.gmra.mrb[10].mxu0 %vm405_vm2, %v3278_v29  ;;  %v4942_v28 = vld [vmem:[%s6551_s2 + $0x120] sm:$0xff]  ;;  %v4947_v29 = vld [vmem:[%s6551_s2 + $0x128] sm:$0xff] }
  0x33   : > { %3617 = vmatprep.mubr.msk.f32.mxu1 %vm4452_vm1, %v4451_v2  ;;  %3855 = vmatprep.mubr.msk.f32.mxu0 %vm4452_vm1, %v4451_v2 }
  0x35   : > { %2175 = vperm.xlu0 %4334, %v4722_v34   ;;  %2178 = vperm.xlu1 %4335, %v4727_v35  }
  0x36   : > { %3618 = vmatmul.mubr.msk.f32.gmra.mrb[12].mxu1 %vm405_vm2, %v3159_v32  ;;  %3856 = vmatmul.mubr.msk.f32.gmra.mrb[12].mxu0 %vm405_vm2, %v3279_v33  ;;  %v3171_v32 = vld [vmem:[%s4585_s30 + $0x91] sm:$0xff]  ;;  %v3291_v33 = vld [vmem:[%s4585_s30 + $0xa2] sm:$0xff] }
  0x37   : > { %3620 = vmatprep.mubr.msk.f32.mxu1 %vm4452_vm1, %v4451_v2  ;;  %3858 = vmatprep.mubr.msk.f32.mxu0 %vm4452_vm1, %v4451_v2 }
  0x39   : > { %2181 = vperm.xlu0 %4334, %v4742_v38   ;;  %2184 = vperm.xlu1 %4335, %v4747_v39  }
  0x3a   : > { %3621 = vmatmul.mubr.msk.f32.gmra.mrb[14].mxu1 %vm405_vm2, %v3160_v36  ;;  %3859 = vmatmul.mubr.msk.f32.gmra.mrb[14].mxu0 %vm405_vm2, %v3280_v37  ;;  %v3172_v36 = vld [vmem:[%s4585_s30 + $0x99] sm:$0xff]  ;;  %v3292_v37 = vld [vmem:[%s4585_s30 + $0xaa] sm:$0xff] }
  0x3b   : > { %3623 = vmatprep.mubr.msk.f32.mxu1 %vm4452_vm1, %v4451_v2  ;;  %3861 = vmatprep.mubr.msk.f32.mxu0 %vm4452_vm1, %v4451_v2 }
  0x3d   : > { %2187 = vperm.xlu0 %4334, %v4762_v42   ;;  %2190 = vperm.xlu1 %4335, %v4767_v43  }
  0x3e   : > { %3624 = vmatmul.mubr.msk.f32.gmra.mrb[16].mxu1 %vm405_vm2, %v3161_v40  ;;  %3862 = vmatmul.mubr.msk.f32.gmra.mrb[16].mxu0 %vm405_vm2, %v3281_v41  ;;  %v4454_v40 = vmov 1   ;;  %v3173_v41 = vld [vmem:[%s4585_s30 + $0xa1] sm:$0xff] }
  0x3f   : > { %3626 = vmatprep.mubr.msk.f32.mxu1 %vm4452_vm1, %v4451_v2  ;;  %3864 = vmatprep.mubr.msk.f32.mxu0 %vm4452_vm1, %v4451_v2 }
  0x41   : > { %2193 = vperm.xlu0 %4334, %v4782_v46   ;;  %2196 = vperm.xlu1 %4335, %v4787_v47  }
  0x42   : > { %3627 = vmatmul.mubr.msk.f32.gmra.mrb[18].mxu1 %vm405_vm2, %v3162_v44  ;;  %3865 = vmatmul.mubr.msk.f32.gmra.mrb[18].mxu0 %vm405_vm2, %v3282_v45  ;;  %v3293_v44 = vld [vmem:[%s4585_s30 + $0xb2] sm:$0xff]  ;;  %v3174_v45 = vld [vmem:[%s4585_s30 + $0xa9] sm:$0xff] }
  0x43   : > { %3629 = vmatprep.mubr.msk.f32.mxu1 %vm4452_vm1, %v4451_v2  ;;  %3867 = vmatprep.mubr.msk.f32.mxu0 %vm4452_vm1, %v4451_v2 }
  0x45   : > { %2199 = vperm.xlu0 %4334, %v4802_v50   ;;  %2202 = vperm.xlu1 %4335, %v4807_v51  }
  0x46   : > { %3630 = vmatmul.mubr.msk.f32.gmra.mrb[20].mxu1 %vm405_vm2, %v3163_v48  ;;  %3868 = vmatmul.mubr.msk.f32.gmra.mrb[20].mxu0 %vm405_vm2, %v3283_v49  ;;  %v3294_v48 = vld [vmem:[%s4585_s30 + $0xba] sm:$0xff]  ;;  %v3186_v49 = vld [vmem:[%s4585_s30 + $0x109] sm:$0xff] }
  0x47   : > { %3632 = vmatprep.mubr.msk.f32.mxu1 %vm4452_vm1, %v4451_v2  ;;  %3870 = vmatprep.mubr.msk.f32.mxu0 %vm4452_vm1, %v4451_v2 }
  0x49   : > { %2205 = vperm.xlu0 %4334, %v4822_v54   ;;  %2208 = vperm.xlu1 %4335, %v4827_v55  }
  0x4a   : > { %3633 = vmatmul.mubr.msk.f32.gmra.mrb[22].mxu1 %vm405_vm2, %v3164_v52  ;;  %3871 = vmatmul.mubr.msk.f32.gmra.mrb[22].mxu0 %vm405_vm2, %v3284_v53  ;;  %v3307_v52 = vld [vmem:[%s4585_s30 + $0x122] sm:$0xff]  ;;  %v3188_v53 = vld [vmem:[%s4585_s30 + $0x119] sm:$0xff] }
  0x4b   : > { %3635 = vmatprep.mubr.msk.f32.mxu1 %vm4452_vm1, %v4451_v2  ;;  %3873 = vmatprep.mubr.msk.f32.mxu0 %vm4452_vm1, %v4451_v2 }
  0x4d   : > { %2211 = vperm.xlu0 %4334, %v4842_v58   ;;  %2214 = vperm.xlu1 %4335, %v4847_v59  }
  0x4e   : > { %3636 = vmatmul.mubr.msk.f32.gmra.mrb[24].mxu1 %vm405_vm2, %v3165_v56  ;;  %3874 = vmatmul.mubr.msk.f32.gmra.mrb[24].mxu0 %vm405_vm2, %v3285_v57  ;;  %v3309_v56 = vld [vmem:[%s4585_s30 + $0x132] sm:$0xff]  ;;  %v3190_v57 = vld [vmem:[%s4585_s30 + $0x129] sm:$0xff] }
  0x4f   : > { %3638 = vmatprep.mubr.msk.f32.mxu1 %vm4452_vm1, %v4451_v2  ;;  %3876 = vmatprep.mubr.msk.f32.mxu0 %vm4452_vm1, %v4451_v2 }
  0x51   : > { %2217 = vperm.xlu0 %4334, %v4862_v62   ;;  %2220 = vperm.xlu1 %4335, %v4867_v63  }
  0x52   : > { %3639 = vmatmul.mubr.msk.f32.gmra.mrb[26].mxu1 %vm405_vm2, %v3166_v60  ;;  %3877 = vmatmul.mubr.msk.f32.gmra.mrb[26].mxu0 %vm405_vm2, %v3286_v61  ;;  %v3311_v60 = vld [vmem:[%s4585_s30 + $0x142] sm:$0xff] }
  0x53   : > { %3641 = vmatprep.mubr.msk.f32.mxu1 %vm4452_vm1, %v4451_v2  ;;  %3879 = vmatprep.mubr.msk.f32.mxu0 %vm4452_vm1, %v4451_v2  ;;  %v322_v61 = vld [vmem:[%s4585_s30] sm:$0xff] }
  0x55   : > { %2223 = vperm.xlu0 %4334, %v4882_v6   ;;  %2226 = vperm.xlu1 %4335, %v4887_v7  }
  0x56   : > { %3642 = vmatmul.mubr.msk.f32.gmra.mrb[28].mxu1 %vm405_vm2, %v3167_v0  ;;  %3880 = vmatmul.mubr.msk.f32.gmra.mrb[28].mxu0 %vm405_vm2, %v3287_v1  ;;  %v3354_v0 = vld [vmem:[%s4585_s30 + $0x1b] sm:$0xff]  ;;  %v3355_v1 = vld [vmem:[%s4585_s30 + $0x23] sm:$0xff] }
  0x57   : > { %3644 = vmatprep.mubr.msk.f32.mxu1 %vm4452_vm1, %v4451_v2  ;;  %3882 = vmatprep.mubr.msk.f32.mxu0 %vm4452_vm1, %v4451_v2 }
  0x59   : > { %2229 = vperm.xlu0 %4334, %v4902_v12   ;;  %2232 = vperm.xlu1 %4335, %v4907_v13  }
  0x5a   : > { %3645 = vmatmul.mubr.msk.f32.gmra.mrb[30].mxu1 %vm405_vm2, %v3168_v8  ;;  %3883 = vmatmul.mubr.msk.f32.gmra.mrb[30].mxu0 %vm405_vm2, %v3288_v9  ;;  %v326_v8 = vld [vmem:[%s4585_s30 + $0x20] sm:$0xff]  ;;  %v3357_v9 = vld [vmem:[%s4585_s30 + $0x33] sm:$0xff] }
  0x5b   : > { %3647 = vmatprep.mubr.msk.f32.mxu1 %vm4452_vm1, %v4451_v2  ;;  %3885 = vmatprep.mubr.msk.f32.mxu0 %vm4452_vm1, %v4451_v2 }
  0x5d   : > { %2235 = vperm.xlu0 %4334, %v4922_v20   ;;  %2238 = vperm.xlu1 %4335, %v4927_v21  }
  0x5e   : > { %3648 = vmatmul.mubr.msk.f32.gmra.mrb[32].mxu1 %vm405_vm2, %v3169_v16  ;;  %3886 = vmatmul.mubr.msk.f32.gmra.mrb[32].mxu0 %vm405_vm2, %v3289_v17  ;;  %v328_v16 = vld [vmem:[%s4585_s30 + $0x30] sm:$0xff]  ;;  %v3359_v17 = vld [vmem:[%s4585_s30 + $0x43] sm:$0xff] }
  0x5f   : > { %3650 = vmatprep.mubr.msk.f32.mxu1 %vm4452_vm1, %v4451_v2  ;;  %3888 = vmatprep.mubr.msk.f32.mxu0 %vm4452_vm1, %v4451_v2 }
  0x61   : > { %2241 = vperm.xlu0 %4334, %v4942_v28   ;;  %2244 = vperm.xlu1 %4335, %v4947_v29  }
  0x62   : > { %3651 = vmatmul.mubr.msk.f32.gmra.mrb[34].mxu1 %vm405_vm2, %v3170_v24  ;;  %3889 = vmatmul.mubr.msk.f32.gmra.mrb[34].mxu0 %vm405_vm2, %v3290_v25  ;;  %v3360_v24 = vld [vmem:[%s4585_s30 + $0x4b] sm:$0xff]  ;;  %v330_v25 = vld [vmem:[%s4585_s30 + $0x40] sm:$0xff] }
  0x63   : > { %3653 = vmatprep.mubr.msk.f32.mxu1 %vm4452_vm1, %v4451_v2  ;;  %3891 = vmatprep.mubr.msk.f32.mxu0 %vm4452_vm1, %v4451_v2 }
  0x65   : > { %4336 = vset.pattern.permute.xlu0 %v4454_v40  ;;  %4337 = vset.pattern.permute.xlu1 %v4454_v40  ;;  %v3364_v40 = vld [vmem:[%s4585_s30 + $0x6b] sm:$0xff] }
  0x66   : > { %3654 = vmatmul.mubr.msk.f32.gmra.mrb[36].mxu1 %vm405_vm2, %v3171_v32  ;;  %3892 = vmatmul.mubr.msk.f32.gmra.mrb[36].mxu0 %vm405_vm2, %v3291_v33  ;;  %v3362_v32 = vld [vmem:[%s4585_s30 + $0x5b] sm:$0xff]  ;;  %v332_v33 = vld [vmem:[%s4585_s30 + $0x50] sm:$0xff] }
  0x67   : > { %3656 = vmatprep.mubr.msk.f32.mxu1 %vm4452_vm1, %v4451_v2  ;;  %3894 = vmatprep.mubr.msk.f32.mxu0 %vm4452_vm1, %v4451_v2 }
  0x68   : > { %2376 = vperm.xlu0 %4336, %v4567_v3   ;;  %2379 = vperm.xlu1 %4337, %v4600_v10   ;;  %v3175_v3 = vld [vmem:[%s4585_s30 + $0xb1] sm:$0xff]  ;;  %v3295_v10 = vld [vmem:[%s4585_s30 + $0xc2] sm:$0xff] }
  0x6a   : > { %3657 = vmatmul.mubr.msk.f32.gmra.mrb[38].mxu1 %vm405_vm2, %v3172_v36  ;;  %3895 = vmatmul.mubr.msk.f32.gmra.mrb[38].mxu0 %vm405_vm2, %v3292_v37  ;;  %v3363_v36 = vld [vmem:[%s4585_s30 + $0x63] sm:$0xff]  ;;  %v333_v37 = vld [vmem:[%s4585_s30 + $0x58] sm:$0xff] }
  0x6b   : > { %3659 = vmatprep.mubr.msk.f32.mxu1 %vm4452_vm1, %v4451_v2  ;;  %3897 = vmatprep.mubr.msk.f32.mxu0 %vm4452_vm1, %v4451_v2 }
  0x6c   : > { %2385 = vperm.xlu0 %4336, %v4605_v11   ;;  %2382 = vperm.xlu1 %4337, %v4572_v4   ;;  %v3176_v4 = vld [vmem:[%s4585_s30 + $0xb9] sm:$0xff]  ;;  %v3296_v11 = vld [vmem:[%s4585_s30 + $0xca] sm:$0xff] }
  0x6e   : > { %3660 = vmatmul.mubr.msk.f32.gmra.mrb[40].mxu1 %vm405_vm2, %v3173_v41  ;;  %3898 = vmatmul.mubr.msk.f32.gmra.mrb[40].mxu0 %vm405_vm2, %v3293_v44  ;;  %v334_v41 = vld [vmem:[%s4585_s30 + $0x60] sm:$0xff]  ;;  %v3365_v44 = vld [vmem:[%s4585_s30 + $0x73] sm:$0xff] }
  0x6f   : > { %3662 = vmatprep.mubr.msk.f32.mxu1 %vm4452_vm1, %v4451_v2  ;;  %3900 = vmatprep.mubr.msk.f32.mxu0 %vm4452_vm1, %v4451_v2 }
  0x70   : > { %2391 = vperm.xlu0 %4336, %v4627_v15   ;;  %2388 = vperm.xlu1 %4337, %v4622_v14   ;;  %v3177_v14 = vld [vmem:[%s4585_s30 + $0xc1] sm:$0xff]  ;;  %v3297_v15 = vld [vmem:[%s4585_s30 + $0xd2] sm:$0xff] }
  0x72   : > { %3663 = vmatmul.mubr.msk.f32.gmra.mrb[42].mxu1 %vm405_vm2, %v3174_v45  ;;  %3901 = vmatmul.mubr.msk.f32.gmra.mrb[42].mxu0 %vm405_vm2, %v3294_v48  ;;  %v335_v45 = vld [vmem:[%s4585_s30 + $0x68] sm:$0xff]  ;;  %v3366_v48 = vld [vmem:[%s4585_s30 + $0x7b] sm:$0xff] }
  0x73   : > { %3665 = vmatprep.mubr.msk.f32.mxu1 %vm4452_vm1, %v4451_v2  ;;  %3903 = vmatprep.mubr.msk.f32.mxu0 %vm4452_vm1, %v4451_v2 }
  0x74   : > { %2397 = vperm.xlu0 %4336, %v4647_v19   ;;  %2394 = vperm.xlu1 %4337, %v4642_v18   ;;  %v3178_v18 = vld [vmem:[%s4585_s30 + $0xc9] sm:$0xff]  ;;  %v3298_v19 = vld [vmem:[%s4585_s30 + $0xda] sm:$0xff] }
  0x76   : > { %3666 = vmatmul.mubr.msk.f32.gmra.mrb[44].mxu1 %vm405_vm2, %v3175_v3  ;;  %3904 = vmatmul.mubr.msk.f32.gmra.mrb[44].mxu0 %vm405_vm2, %v3295_v10  ;;  %v336_v3 = vld [vmem:[%s4585_s30 + $0x70] sm:$0xff]  ;;  %v3367_v10 = vld [vmem:[%s4585_s30 + $0x83] sm:$0xff] }
  0x77   : > { %3668 = vmatprep.mubr.msk.f32.mxu1 %vm4452_vm1, %v4451_v2  ;;  %3906 = vmatprep.mubr.msk.f32.mxu0 %vm4452_vm1, %v4451_v2 }
  0x78   : > { %2403 = vperm.xlu0 %4336, %v4667_v23   ;;  %2400 = vperm.xlu1 %4337, %v4662_v22   ;;  %v3179_v22 = vld [vmem:[%s4585_s30 + $0xd1] sm:$0xff]  ;;  %v3299_v23 = vld [vmem:[%s4585_s30 + $0xe2] sm:$0xff] }
  0x7a   : > { %3669 = vmatmul.mubr.msk.f32.gmra.mrb[46].mxu1 %vm405_vm2, %v3176_v4  ;;  %3907 = vmatmul.mubr.msk.f32.gmra.mrb[46].mxu0 %vm405_vm2, %v3296_v11  ;;  %v337_v4 = vld [vmem:[%s4585_s30 + $0x78] sm:$0xff]  ;;  %v3368_v11 = vld [vmem:[%s4585_s30 + $0x8b] sm:$0xff] }
  0x7b   : > { %3671 = vmatprep.mubr.msk.f32.mxu1 %vm4452_vm1, %v4451_v2  ;;  %3909 = vmatprep.mubr.msk.f32.mxu0 %vm4452_vm1, %v4451_v2 }
  0x7c   : > { %2409 = vperm.xlu0 %4336, %v4687_v27   ;;  %2406 = vperm.xlu1 %4337, %v4682_v26   ;;  %v3180_v26 = vld [vmem:[%s4585_s30 + $0xd9] sm:$0xff]  ;;  %v3300_v27 = vld [vmem:[%s4585_s30 + $0xea] sm:$0xff] }
  0x7e   : > { %3672 = vmatmul.mubr.msk.f32.gmra.mrb[48].mxu1 %vm405_vm2, %v3177_v14  ;;  %3910 = vmatmul.mubr.msk.f32.gmra.mrb[48].mxu0 %vm405_vm2, %v3297_v15  ;;  %v338_v14 = vld [vmem:[%s4585_s30 + $0x80] sm:$0xff]  ;;  %v3369_v15 = vld [vmem:[%s4585_s30 + $0x93] sm:$0xff] }
  0x7f   : > { %3674 = vmatprep.mubr.msk.f32.mxu1 %vm4452_vm1, %v4451_v2  ;;  %3912 = vmatprep.mubr.msk.f32.mxu0 %vm4452_vm1, %v4451_v2 }
  0x80   : > { %2415 = vperm.xlu0 %4336, %v4707_v31   ;;  %2412 = vperm.xlu1 %4337, %v4702_v30   ;;  %v3181_v30 = vld [vmem:[%s4585_s30 + $0xe1] sm:$0xff]  ;;  %v3301_v31 = vld [vmem:[%s4585_s30 + $0xf2] sm:$0xff] }
  0x82   : > { %3675 = vmatmul.mubr.msk.f32.gmra.mrb[50].mxu1 %vm405_vm2, %v3178_v18  ;;  %3913 = vmatmul.mubr.msk.f32.gmra.mrb[50].mxu0 %vm405_vm2, %v3298_v19  ;;  %v339_v18 = vld [vmem:[%s4585_s30 + $0x88] sm:$0xff]  ;;  %v3370_v19 = vld [vmem:[%s4585_s30 + $0x9b] sm:$0xff] }
  0x83   : > { %3677 = vmatprep.mubr.msk.f32.mxu1 %vm4452_vm1, %v4451_v2  ;;  %3915 = vmatprep.mubr.msk.f32.mxu0 %vm4452_vm1, %v4451_v2 }
  0x84   : > { %2421 = vperm.xlu0 %4336, %v4727_v35   ;;  %2418 = vperm.xlu1 %4337, %v4722_v34   ;;  %v3182_v34 = vld [vmem:[%s4585_s30 + $0xe9] sm:$0xff]  ;;  %v3302_v35 = vld [vmem:[%s4585_s30 + $0xfa] sm:$0xff] }
  0x86   : > { %3678 = vmatmul.mubr.msk.f32.gmra.mrb[52].mxu1 %vm405_vm2, %v3179_v22  ;;  %3916 = vmatmul.mubr.msk.f32.gmra.mrb[52].mxu0 %vm405_vm2, %v3299_v23  ;;  %v340_v22 = vld [vmem:[%s4585_s30 + $0x90] sm:$0xff]  ;;  %v3371_v23 = vld [vmem:[%s4585_s30 + $0xa3] sm:$0xff] }
  0x87   : > { %3680 = vmatprep.mubr.msk.f32.mxu1 %vm4452_vm1, %v4451_v2  ;;  %3918 = vmatprep.mubr.msk.f32.mxu0 %vm4452_vm1, %v4451_v2 }
  0x88   : > { %2427 = vperm.xlu0 %4336, %v4747_v39   ;;  %2424 = vperm.xlu1 %4337, %v4742_v38   ;;  %v3183_v38 = vld [vmem:[%s4585_s30 + $0xf1] sm:$0xff]  ;;  %v3303_v39 = vld [vmem:[%s4585_s30 + $0x102] sm:$0xff] }
  0x8a   : > { %3681 = vmatmul.mubr.msk.f32.gmra.mrb[54].mxu1 %vm405_vm2, %v3180_v26  ;;  %3919 = vmatmul.mubr.msk.f32.gmra.mrb[54].mxu0 %vm405_vm2, %v3300_v27  ;;  %v341_v26 = vld [vmem:[%s4585_s30 + $0x98] sm:$0xff]  ;;  %v3372_v27 = vld [vmem:[%s4585_s30 + $0xab] sm:$0xff] }
  0x8b   : > { %3683 = vmatprep.mubr.msk.f32.mxu1 %vm4452_vm1, %v4451_v2  ;;  %3921 = vmatprep.mubr.msk.f32.mxu0 %vm4452_vm1, %v4451_v2 }
  0x8c   : > { %2433 = vperm.xlu0 %4336, %v4767_v43   ;;  %2430 = vperm.xlu1 %4337, %v4762_v42   ;;  %v3184_v42 = vld [vmem:[%s4585_s30 + $0xf9] sm:$0xff]  ;;  %v3304_v43 = vld [vmem:[%s4585_s30 + $0x10a] sm:$0xff] }
  0x8e   : > { %3684 = vmatmul.mubr.msk.f32.gmra.mrb[56].mxu1 %vm405_vm2, %v3181_v30  ;;  %3922 = vmatmul.mubr.msk.f32.gmra.mrb[56].mxu0 %vm405_vm2, %v3301_v31  ;;  %v342_v30 = vld [vmem:[%s4585_s30 + $0xa0] sm:$0xff]  ;;  %v3373_v31 = vld [vmem:[%s4585_s30 + $0xb3] sm:$0xff] }
  0x8f   : > { %3686 = vmatprep.mubr.msk.f32.mxu1 %vm4452_vm1, %v4451_v2  ;;  %3924 = vmatprep.mubr.msk.f32.mxu0 %vm4452_vm1, %v4451_v2 }
  0x90   : > { %2439 = vperm.xlu0 %4336, %v4787_v47   ;;  %2436 = vperm.xlu1 %4337, %v4782_v46   ;;  %v3185_v46 = vld [vmem:[%s4585_s30 + $0x101] sm:$0xff]  ;;  %v3305_v47 = vld [vmem:[%s4585_s30 + $0x112] sm:$0xff] }
  0x92   : > { %3687 = vmatmul.mubr.msk.f32.gmra.mrb[58].mxu1 %vm405_vm2, %v3182_v34  ;;  %3925 = vmatmul.mubr.msk.f32.gmra.mrb[58].mxu0 %vm405_vm2, %v3302_v35  ;;  %v343_v34 = vld [vmem:[%s4585_s30 + $0xa8] sm:$0xff]  ;;  %v3374_v35 = vld [vmem:[%s4585_s30 + $0xbb] sm:$0xff] }
  0x93   : > { %3689 = vmatprep.mubr.msk.f32.mxu1 %vm4452_vm1, %v4451_v2  ;;  %3927 = vmatprep.mubr.msk.f32.mxu0 %vm4452_vm1, %v4451_v2 }
  0x94   : > { %2445 = vperm.xlu0 %4336, %v4807_v51   ;;  %2442 = vperm.xlu1 %4337, %v4802_v50   ;;  %v3306_v50 = vld [vmem:[%s4585_s30 + $0x11a] sm:$0xff]  ;;  %v3187_v51 = vld [vmem:[%s4585_s30 + $0x111] sm:$0xff] }
  0x96   : > { %3690 = vmatmul.mubr.msk.f32.gmra.mrb[60].mxu1 %vm405_vm2, %v3183_v38  ;;  %3928 = vmatmul.mubr.msk.f32.gmra.mrb[60].mxu0 %vm405_vm2, %v3303_v39  ;;  %v344_v38 = vld [vmem:[%s4585_s30 + $0xb0] sm:$0xff]  ;;  %v3375_v39 = vld [vmem:[%s4585_s30 + $0xc3] sm:$0xff] }
  0x97   : > { %3692 = vmatprep.mubr.msk.f32.mxu1 %vm4452_vm1, %v4451_v2  ;;  %3930 = vmatprep.mubr.msk.f32.mxu0 %vm4452_vm1, %v4451_v2 }
  0x98   : > { %2451 = vperm.xlu0 %4336, %v4827_v55   ;;  %2448 = vperm.xlu1 %4337, %v4822_v54   ;;  %v3308_v54 = vld [vmem:[%s4585_s30 + $0x12a] sm:$0xff]  ;;  %v3189_v55 = vld [vmem:[%s4585_s30 + $0x121] sm:$0xff] }
  0x9a   : > { %3693 = vmatmul.mubr.msk.f32.gmra.mrb[62].mxu1 %vm405_vm2, %v3184_v42  ;;  %3931 = vmatmul.mubr.msk.f32.gmra.mrb[62].mxu0 %vm405_vm2, %v3304_v43  ;;  %v345_v42 = vld [vmem:[%s4585_s30 + $0xb8] sm:$0xff]  ;;  %v3376_v43 = vld [vmem:[%s4585_s30 + $0xcb] sm:$0xff] }
  0x9b   : > { %3695 = vmatprep.mubr.msk.f32.mxu1 %vm4452_vm1, %v4451_v2  ;;  %3933 = vmatprep.mubr.msk.f32.mxu0 %vm4452_vm1, %v4451_v2 }
  0x9c   : > { %2457 = vperm.xlu0 %4336, %v4847_v59   ;;  %2454 = vperm.xlu1 %4337, %v4842_v58   ;;  %v3310_v58 = vld [vmem:[%s4585_s30 + $0x13a] sm:$0xff]  ;;  %v3191_v59 = vld [vmem:[%s4585_s30 + $0x131] sm:$0xff] }
  0x9e   : > { %3696 = vmatmul.mubr.msk.f32.gmra.mrb[64].mxu1 %vm405_vm2, %v3185_v46  ;;  %3934 = vmatmul.mubr.msk.f32.gmra.mrb[64].mxu0 %vm405_vm2, %v3305_v47  ;;  %v5351_v46 = vpop.permute.xlu0 %2133  ;;  %v5353_v47 = vpop.permute.xlu1 %2139 }
  0x9f   : > { %3698 = vmatprep.mubr.msk.f32.mxu1 %vm4452_vm1, %v4451_v2  ;;  %3936 = vmatprep.mubr.msk.f32.mxu0 %vm4452_vm1, %v4451_v2 }
  0xa0   : > { %2463 = vperm.xlu0 %4336, %v4867_v63   ;;  %2460 = vperm.xlu1 %4337, %v4862_v62   ;;  %v3353_v62 = vld [vmem:[%s4585_s30 + $0x13] sm:$0xff]  ;;  %v323_v63 = vld [vmem:[%s4585_s30 + $0x8] sm:$0xff] }
  0xa2   : > { %3699 = vmatmul.mubr.msk.f32.gmra.mrb[66].mxu1 %vm405_vm2, %v3186_v49  ;;  %3937 = vmatmul.mubr.msk.f32.gmra.mrb[66].mxu0 %vm405_vm2, %v3306_v50  ;;  %v346_v49 = vld [vmem:[%s4585_s30 + $0xc0] sm:$0xff]  ;;  %v3377_v50 = vld [vmem:[%s4585_s30 + $0xd3] sm:$0xff] }
  0xa3   : > { %3701 = vmatprep.mubr.msk.f32.mxu1 %vm4452_vm1, %v4451_v2  ;;  %3939 = vmatprep.mubr.msk.f32.mxu0 %vm4452_vm1, %v4451_v2 }
  0xa4   : > { %2469 = vperm.xlu0 %4336, %v4887_v7   ;;  %2466 = vperm.xlu1 %4337, %v4882_v6   ;;  %v325_v6 = vld [vmem:[%s4585_s30 + $0x18] sm:$0xff]  ;;  %v3356_v7 = vld [vmem:[%s4585_s30 + $0x2b] sm:$0xff] }
  0xa6   : > { %3702 = vmatmul.mubr.msk.f32.gmra.mrb[68].mxu1 %vm405_vm2, %v3187_v51  ;;  %3940 = vmatmul.mubr.msk.f32.gmra.mrb[68].mxu0 %vm405_vm2, %v3307_v52  ;;  %v5363_v51 = vpop.permute.xlu0 %2136  ;;  %v5365_v52 = vpop.permute.xlu1 %2142 }
  0xa7   : > { %3704 = vmatprep.mubr.msk.f32.mxu1 %vm4452_vm1, %v4451_v2  ;;  %3942 = vmatprep.mubr.msk.f32.mxu0 %vm4452_vm1, %v4451_v2 }
  0xa8   : > { %2475 = vperm.xlu0 %4336, %v4907_v13   ;;  %2472 = vperm.xlu1 %4337, %v4902_v12   ;;  %v327_v12 = vld [vmem:[%s4585_s30 + $0x28] sm:$0xff]  ;;  %v3358_v13 = vld [vmem:[%s4585_s30 + $0x3b] sm:$0xff] }
  0xaa   : > { %3705 = vmatmul.mubr.msk.f32.gmra.mrb[70].mxu1 %vm405_vm2, %v3188_v53  ;;  %3943 = vmatmul.mubr.msk.f32.gmra.mrb[70].mxu0 %vm405_vm2, %v3308_v54  ;;  %v347_v53 = vld [vmem:[%s4585_s30 + $0xc8] sm:$0xff]  ;;  %v3378_v54 = vld [vmem:[%s4585_s30 + $0xdb] sm:$0xff] }
  0xab   : > { %3707 = vmatprep.mubr.msk.f32.mxu1 %vm4452_vm1, %v4451_v2  ;;  %3945 = vmatprep.mubr.msk.f32.mxu0 %vm4452_vm1, %v4451_v2 }
  0xac   : > { %2481 = vperm.xlu0 %4336, %v4927_v21   ;;  %2478 = vperm.xlu1 %4337, %v4922_v20   ;;  %v2129_v20 = vld [vmem:[%s6551_s2 + $0x130] sm:$0xff]  ;;  %v329_v21 = vld [vmem:[%s4585_s30 + $0x38] sm:$0xff] }
  0xae   : > { %3708 = vmatmul.mubr.msk.f32.gmra.mrb[72].mxu1 %vm405_vm2, %v3189_v55  ;;  %3946 = vmatmul.mubr.msk.f32.gmra.mrb[72].mxu0 %vm405_vm2, %v3309_v56  ;;  %v348_v55 = vld [vmem:[%s4585_s30 + $0xd0] sm:$0xff]  ;;  %v3379_v56 = vld [vmem:[%s4585_s30 + $0xe3] sm:$0xff] }
  0xaf   : > { %3710 = vmatprep.mubr.msk.f32.mxu1 %vm4452_vm1, %v4451_v2  ;;  %3948 = vmatprep.mubr.msk.f32.mxu0 %vm4452_vm1, %v4451_v2 }
  0xb0   : > { %2487 = vperm.xlu0 %4336, %v4947_v29   ;;  %2484 = vperm.xlu1 %4337, %v4942_v28   ;;  %v3361_v28 = vld [vmem:[%s4585_s30 + $0x53] sm:$0xff]  ;;  %v331_v29 = vld [vmem:[%s4585_s30 + $0x48] sm:$0xff] }
  0xb2   : > { %3711 = vmatmul.mubr.msk.f32.gmra.mrb[74].mxu1 %vm405_vm2, %v3190_v57  ;;  %3949 = vmatmul.mubr.msk.f32.gmra.mrb[74].mxu0 %vm405_vm2, %v3310_v58  ;;  %v5383_v57 = vpop.permute.xlu0 %2145  ;;  %v5385_v58 = vpop.permute.xlu1 %2148 }
  0xb3   : > { %3713 = vmatprep.mubr.msk.f32.mxu1 %vm4452_vm1, %v4451_v2  ;;  %3951 = vmatprep.mubr.msk.f32.mxu0 %vm4452_vm1, %v4451_v2 }
  0xb4   : > { %4338 = vset.pattern.permute.xlu1 %v4453_v5  ;;  %v324_v5 = vld [vmem:[%s4585_s30 + $0x10] sm:$0xff]  ;;  %2490 = vperm.xlu0 %4336, %v2129_v20  }
  0xb5   : > { %2247 = vperm.xlu1 %4338, %v2129_v20   ;;  %v354_v20 = vld [vmem:[%s4585_s30 + $0x100] sm:$0xff] }
  0xb6   : > { %3714 = vmatmul.mubr.msk.f32.gmra.mrb[76].mxu1 %vm405_vm2, %v3191_v59  ;;  %3952 = vmatmul.mubr.msk.f32.gmra.mrb[76].mxu0 %vm405_vm2, %v3311_v60  ;;  %v349_v59 = vld [vmem:[%s4585_s30 + $0xd8] sm:$0xff]  ;;  %v3380_v60 = vld [vmem:[%s4585_s30 + $0xeb] sm:$0xff] }
  0xb7   : > { %3718 = vmatprep.mubr.msk.f32.mxu1 %vm4452_vm1, %v4451_v2  ;;  %3956 = vmatprep.mubr.msk.f32.mxu0 %vm4452_vm1, %v4451_v2 }
  0xba   : > { %3719 = vmatmul.mubr.msk.f32.vlgmr.msra.gmra.mrb[0].mxu1 %vm405_vm2, %v322_v61  ;;  %3957 = vmatmul.mubr.msk.f32.vlgmr.msra.gmra.mrb[0].mxu0 %vm405_vm2, %v3353_v62  ;;  %v5395_v61 = vpop.permute.xlu0 %2151  ;;  %v5397_v62 = vpop.permute.xlu1 %2154 }
  0xbb   : > { %3721 = vmatprep.mubr.msk.f32.mxu1 %vm4452_vm1, %v4451_v2  ;;  %3959 = vmatprep.mubr.msk.f32.mxu0 %vm4452_vm1, %v4451_v2 }
  0xbe   : > { %3722 = vmatmul.mubr.msk.f32.gmra.mrb[2].mxu1 %vm405_vm2, %v323_v63  ;;  %3960 = vmatmul.mubr.msk.f32.gmra.mrb[2].mxu0 %vm405_vm2, %v3354_v0  ;;  %v350_v63 = vld [vmem:[%s4585_s30 + $0xe0] sm:$0xff]  ;;  %v3381_v0 = vld [vmem:[%s4585_s30 + $0xf3] sm:$0xff] }
  0xbf   : > { %3724 = vmatprep.mubr.msk.f32.mxu1 %vm4452_vm1, %v4451_v2  ;;  %3962 = vmatprep.mubr.msk.f32.mxu0 %vm4452_vm1, %v4451_v2 }
  0xc2   : > { %3725 = vmatmul.mubr.msk.f32.gmra.mrb[4].mxu1 %vm405_vm2, %v324_v5  ;;  %3963 = vmatmul.mubr.msk.f32.gmra.mrb[4].mxu0 %vm405_vm2, %v3355_v1  ;;  %v351_v5 = vld [vmem:[%s4585_s30 + $0xe8] sm:$0xff]  ;;  %v3382_v1 = vld [vmem:[%s4585_s30 + $0xfb] sm:$0xff] }
  0xc3   : > { %3727 = vmatprep.mubr.msk.f32.mxu1 %vm4452_vm1, %v4451_v2  ;;  %3965 = vmatprep.mubr.msk.f32.mxu0 %vm4452_vm1, %v4451_v2 }
  0xc6   : > { %3728 = vmatmul.mubr.msk.f32.gmra.mrb[6].mxu1 %vm405_vm2, %v325_v6  ;;  %3966 = vmatmul.mubr.msk.f32.gmra.mrb[6].mxu0 %vm405_vm2, %v3356_v7  ;;  %v5415_v6 = vpop.permute.xlu0 %2157  ;;  %v5417_v7 = vpop.permute.xlu1 %2160 }
  0xc7   : > { %3730 = vmatprep.mubr.msk.f32.mxu1 %vm4452_vm1, %v4451_v2  ;;  %3968 = vmatprep.mubr.msk.f32.mxu0 %vm4452_vm1, %v4451_v2 }
  0xca   : > { %3731 = vmatmul.mubr.msk.f32.gmra.mrb[8].mxu1 %vm405_vm2, %v326_v8  ;;  %3969 = vmatmul.mubr.msk.f32.gmra.mrb[8].mxu0 %vm405_vm2, %v3357_v9  ;;  %v352_v8 = vld [vmem:[%s4585_s30 + $0xf0] sm:$0xff]  ;;  %v3383_v9 = vld [vmem:[%s4585_s30 + $0x103] sm:$0xff] }
  0xcb   : > { %3733 = vmatprep.mubr.msk.f32.mxu1 %vm4452_vm1, %v4451_v2  ;;  %3971 = vmatprep.mubr.msk.f32.mxu0 %vm4452_vm1, %v4451_v2 }
  0xce   : > { %3734 = vmatmul.mubr.msk.f32.gmra.mrb[10].mxu1 %vm405_vm2, %v327_v12  ;;  %3972 = vmatmul.mubr.msk.f32.gmra.mrb[10].mxu0 %vm405_vm2, %v3358_v13  ;;  %v5427_v12 = vpop.permute.xlu0 %2163  ;;  %v5429_v13 = vpop.permute.xlu1 %2166 }
  0xcf   : > { %3736 = vmatprep.mubr.msk.f32.mxu1 %vm4452_vm1, %v4451_v2  ;;  %3974 = vmatprep.mubr.msk.f32.mxu0 %vm4452_vm1, %v4451_v2 }
  0xd2   : > { %3737 = vmatmul.mubr.msk.f32.gmra.mrb[12].mxu1 %vm405_vm2, %v328_v16  ;;  %3975 = vmatmul.mubr.msk.f32.gmra.mrb[12].mxu0 %vm405_vm2, %v3359_v17  ;;  %v353_v16 = vld [vmem:[%s4585_s30 + $0xf8] sm:$0xff]  ;;  %v3384_v17 = vld [vmem:[%s4585_s30 + $0x10b] sm:$0xff] }
  0xd3   : > { %3739 = vmatprep.mubr.msk.f32.mxu1 %vm4452_vm1, %v4451_v2  ;;  %3977 = vmatprep.mubr.msk.f32.mxu0 %vm4452_vm1, %v4451_v2 }
  0xd6   : > { %3740 = vmatmul.mubr.msk.f32.gmra.mrb[14].mxu1 %vm405_vm2, %v329_v21  ;;  %3978 = vmatmul.mubr.msk.f32.gmra.mrb[14].mxu0 %vm405_vm2, %v3360_v24  ;;  %v3385_v21 = vld [vmem:[%s4585_s30 + $0x113] sm:$0xff]  ;;  %v5447_v24 = vpop.permute.xlu0 %2169 }
  0xd7   : > { %3742 = vmatprep.mubr.msk.f32.mxu1 %vm4452_vm1, %v4451_v2  ;;  %3980 = vmatprep.mubr.msk.f32.mxu0 %vm4452_vm1, %v4451_v2 }
  0xda   : > { %3743 = vmatmul.mubr.msk.f32.gmra.mrb[16].mxu1 %vm405_vm2, %v330_v25  ;;  %3981 = vmatmul.mubr.msk.f32.gmra.mrb[16].mxu0 %vm405_vm2, %v3361_v28  ;;  %v5449_v25 = vpop.permute.xlu1 %2172  ;;  %v355_v28 = vld [vmem:[%s4585_s30 + $0x108] sm:$0xff] }
  0xdb   : > { %3745 = vmatprep.mubr.msk.f32.mxu1 %vm4452_vm1, %v4451_v2  ;;  %3983 = vmatprep.mubr.msk.f32.mxu0 %vm4452_vm1, %v4451_v2 }
  0xde   : > { %3746 = vmatmul.mubr.msk.f32.gmra.mrb[18].mxu1 %vm405_vm2, %v331_v29  ;;  %3984 = vmatmul.mubr.msk.f32.gmra.mrb[18].mxu0 %vm405_vm2, %v3362_v32  ;;  %v3386_v29 = vld [vmem:[%s4585_s30 + $0x11b] sm:$0xff]  ;;  %v5459_v32 = vpop.permute.xlu0 %2175 }
  0xdf   : > { %3748 = vmatprep.mubr.msk.f32.mxu1 %vm4452_vm1, %v4451_v2  ;;  %3986 = vmatprep.mubr.msk.f32.mxu0 %vm4452_vm1, %v4451_v2 }
  0xe2   : > { %3749 = vmatmul.mubr.msk.f32.gmra.mrb[20].mxu1 %vm405_vm2, %v332_v33  ;;  %3987 = vmatmul.mubr.msk.f32.gmra.mrb[20].mxu0 %vm405_vm2, %v3363_v36  ;;  %v5461_v33 = vpop.permute.xlu1 %2178  ;;  %v356_v36 = vld [vmem:[%s4585_s30 + $0x110] sm:$0xff] }
  0xe3   : > { %3751 = vmatprep.mubr.msk.f32.mxu1 %vm4452_vm1, %v4451_v2  ;;  %3989 = vmatprep.mubr.msk.f32.mxu0 %vm4452_vm1, %v4451_v2 }
  0xe6   : > { %3752 = vmatmul.mubr.msk.f32.gmra.mrb[22].mxu1 %vm405_vm2, %v333_v37  ;;  %3990 = vmatmul.mubr.msk.f32.gmra.mrb[22].mxu0 %vm405_vm2, %v3364_v40  ;;  %v3387_v37 = vld [vmem:[%s4585_s30 + $0x123] sm:$0xff]  ;;  %v357_v40 = vld [vmem:[%s4585_s30 + $0x118] sm:$0xff] }
  0xe7   : > { %3754 = vmatprep.mubr.msk.f32.mxu1 %vm4452_vm1, %v4451_v2  ;;  %3992 = vmatprep.mubr.msk.f32.mxu0 %vm4452_vm1, %v4451_v2 }
  0xea   : > { %3755 = vmatmul.mubr.msk.f32.gmra.mrb[24].mxu1 %vm405_vm2, %v334_v41  ;;  %3993 = vmatmul.mubr.msk.f32.gmra.mrb[24].mxu0 %vm405_vm2, %v3365_v44  ;;  %v3388_v41 = vld [vmem:[%s4585_s30 + $0x12b] sm:$0xff]  ;;  %v5479_v44 = vpop.permute.xlu0 %2181 }
  0xeb   : > { %3757 = vmatprep.mubr.msk.f32.mxu1 %vm4452_vm1, %v4451_v2  ;;  %3995 = vmatprep.mubr.msk.f32.mxu0 %vm4452_vm1, %v4451_v2 }
  0xee   : > { %3758 = vmatmul.mubr.msk.f32.gmra.mrb[26].mxu1 %vm405_vm2, %v335_v45  ;;  %3996 = vmatmul.mubr.msk.f32.gmra.mrb[26].mxu0 %vm405_vm2, %v3366_v48  ;;  %v5481_v45 = vpop.permute.xlu1 %2184  ;;  %v358_v48 = vld [vmem:[%s4585_s30 + $0x120] sm:$0xff] }
  0xef   : > { %3760 = vmatprep.mubr.msk.f32.mxu1 %vm4452_vm1, %v4451_v2  ;;  %3998 = vmatprep.mubr.msk.f32.mxu0 %vm4452_vm1, %v4451_v2 }
  0xf2   : > { %3761 = vmatmul.mubr.msk.f32.gmra.mrb[28].mxu1 %vm405_vm2, %v336_v3  ;;  %3999 = vmatmul.mubr.msk.f32.gmra.mrb[28].mxu0 %vm405_vm2, %v3367_v10  ;;  %v3389_v3 = vld [vmem:[%s4585_s30 + $0x133] sm:$0xff]  ;;  %v5491_v10 = vpop.permute.xlu0 %2187 }
  0xf3   : > { %3763 = vmatprep.mubr.msk.f32.mxu1 %vm4452_vm1, %v4451_v2  ;;  %4001 = vmatprep.mubr.msk.f32.mxu0 %vm4452_vm1, %v4451_v2 }
  0xf6   : > { %3764 = vmatmul.mubr.msk.f32.gmra.mrb[30].mxu1 %vm405_vm2, %v337_v4  ;;  %4002 = vmatmul.mubr.msk.f32.gmra.mrb[30].mxu0 %vm405_vm2, %v3368_v11  ;;  %v5493_v4 = vpop.permute.xlu1 %2190  ;;  %v359_v11 = vld [vmem:[%s4585_s30 + $0x128] sm:$0xff] }
  0xf7   : > { %3766 = vmatprep.mubr.msk.f32.mxu1 %vm4452_vm1, %v4451_v2  ;;  %4004 = vmatprep.mubr.msk.f32.mxu0 %vm4452_vm1, %v4451_v2 }
  0xfa   : > { %3767 = vmatmul.mubr.msk.f32.gmra.mrb[32].mxu1 %vm405_vm2, %v338_v14  ;;  %4005 = vmatmul.mubr.msk.f32.gmra.mrb[32].mxu0 %vm405_vm2, %v3369_v15  ;;  %v3390_v14 = vld [vmem:[%s4585_s30 + $0x13b] sm:$0xff]  ;;  %v360_v15 = vld [vmem:[%s4585_s30 + $0x130] sm:$0xff] }
  0xfb   : > { %3769 = vmatprep.mubr.msk.f32.mxu1 %vm4452_vm1, %v4451_v2  ;;  %4007 = vmatprep.mubr.msk.f32.mxu0 %vm4452_vm1, %v4451_v2 }
  0xfe   : > { %3770 = vmatmul.mubr.msk.f32.gmra.mrb[34].mxu1 %vm405_vm2, %v339_v18  ;;  %4008 = vmatmul.mubr.msk.f32.gmra.mrb[34].mxu0 %vm405_vm2, %v3370_v19  ;;  %v3391_v18 = vld [vmem:[%s4585_s30 + $0x143] sm:$0xff]  ;;  %v5511_v19 = vpop.permute.xlu0 %2193 }
  0xff   : > { %3772 = vmatprep.mubr.msk.f32.mxu1 %vm4452_vm1, %v4451_v2  ;;  %4010 = vmatprep.mubr.msk.f32.mxu0 %vm4452_vm1, %v4451_v2 }
 0x102   : > { %3773 = vmatmul.mubr.msk.f32.gmra.mrb[36].mxu1 %vm405_vm2, %v340_v22  ;;  %4011 = vmatmul.mubr.msk.f32.gmra.mrb[36].mxu0 %vm405_vm2, %v3371_v23  ;;  %v5513_v22 = vpop.permute.xlu1 %2196  ;;  %v5517_v23 = vpop.permute.xlu0 %2199 }
 0x103   : > { %3775 = vmatprep.mubr.msk.f32.mxu1 %vm4452_vm1, %v4451_v2  ;;  %4013 = vmatprep.mubr.msk.f32.mxu0 %vm4452_vm1, %v4451_v2 }
 0x106   : > { %3776 = vmatmul.mubr.msk.f32.gmra.mrb[38].mxu1 %vm405_vm2, %v341_v26  ;;  %4014 = vmatmul.mubr.msk.f32.gmra.mrb[38].mxu0 %vm405_vm2, %v3372_v27  ;;  %v5519_v26 = vpop.permute.xlu1 %2202  ;;  %v5521_v27 = vpop.permute.xlu0 %2205 }
 0x107   : > { %3778 = vmatprep.mubr.msk.f32.mxu1 %vm4452_vm1, %v4451_v2  ;;  %4016 = vmatprep.mubr.msk.f32.mxu0 %vm4452_vm1, %v4451_v2 }
 0x10a   : > { %3779 = vmatmul.mubr.msk.f32.gmra.mrb[40].mxu1 %vm405_vm2, %v342_v30  ;;  %4017 = vmatmul.mubr.msk.f32.gmra.mrb[40].mxu0 %vm405_vm2, %v3373_v31  ;;  %v5523_v30 = vpop.permute.xlu1 %2208  ;;  %v5525_v31 = vpop.permute.xlu0 %2211 }
 0x10b   : > { %3781 = vmatprep.mubr.msk.f32.mxu1 %vm4452_vm1, %v4451_v2  ;;  %4019 = vmatprep.mubr.msk.f32.mxu0 %vm4452_vm1, %v4451_v2 }
 0x10e   : > { %3782 = vmatmul.mubr.msk.f32.gmra.mrb[42].mxu1 %vm405_vm2, %v343_v34  ;;  %4020 = vmatmul.mubr.msk.f32.gmra.mrb[42].mxu0 %vm405_vm2, %v3374_v35  ;;  %v5529_v34 = vpop.permute.xlu0 %2217 }
 0x10f   : > { %3784 = vmatprep.mubr.msk.f32.mxu1 %vm4452_vm1, %v4451_v2  ;;  %4022 = vmatprep.mubr.msk.f32.mxu0 %vm4452_vm1, %v4451_v2 }
 0x112   : > { %3785 = vmatmul.mubr.msk.f32.gmra.mrb[44].mxu1 %vm405_vm2, %v344_v38  ;;  %4023 = vmatmul.mubr.msk.f32.gmra.mrb[44].mxu0 %vm405_vm2, %v3375_v39  ;;  %v5533_v38 = vpop.permute.xlu0 %2223 }
 0x113   : > { %3787 = vmatprep.mubr.msk.f32.mxu1 %vm4452_vm1, %v4451_v2  ;;  %4025 = vmatprep.mubr.msk.f32.mxu0 %vm4452_vm1, %v4451_v2 }
 0x116   : > { %3788 = vmatmul.mubr.msk.f32.gmra.mrb[46].mxu1 %vm405_vm2, %v345_v42  ;;  %4026 = vmatmul.mubr.msk.f32.gmra.mrb[46].mxu0 %vm405_vm2, %v3376_v43  ;;  %v5537_v42 = vpop.permute.xlu0 %2229 }
 0x117   : > { %3790 = vmatprep.mubr.msk.f32.mxu1 %vm4452_vm1, %v4451_v2  ;;  %4028 = vmatprep.mubr.msk.f32.mxu0 %vm4452_vm1, %v4451_v2 }
 0x11a   : > { %3791 = vmatmul.mubr.msk.f32.gmra.mrb[48].mxu1 %vm405_vm2, %v346_v49  ;;  %4029 = vmatmul.mubr.msk.f32.gmra.mrb[48].mxu0 %vm405_vm2, %v3377_v50  ;;  %v2249_v49 = vlaneseq }
 0x11b   : > { %3793 = vmatprep.mubr.msk.f32.mxu1 %vm4452_vm1, %v4451_v2  ;;  %4031 = vmatprep.mubr.msk.f32.mxu0 %vm4452_vm1, %v4451_v2 }
 0x11c   : > { %v2250_v50 = vshrl.u32 %v2249_v49, 7 }
 0x11e   : > { %3794 = vmatmul.mubr.msk.f32.gmra.mrb[50].mxu1 %vm405_vm2, %v347_v53  ;;  %4032 = vmatmul.mubr.msk.f32.gmra.mrb[50].mxu0 %vm405_vm2, %v3378_v54  ;;  %v5541_v53 = vpop.permute.xlu0 %2235 }
 0x11f   : > { %3796 = vmatprep.mubr.msk.f32.mxu1 %vm4452_vm1, %v4451_v2  ;;  %4034 = vmatprep.mubr.msk.f32.mxu0 %vm4452_vm1, %v4451_v2 }
 0x122   : > { %3797 = vmatmul.mubr.msk.f32.gmra.mrb[52].mxu1 %vm405_vm2, %v348_v55  ;;  %4035 = vmatmul.mubr.msk.f32.gmra.mrb[52].mxu0 %vm405_vm2, %v3379_v56  ;;  %v2130_v55 = vld [vmem:[%s6552_s3] sm:$0x1]  ;;  %v2251_v56 = vsub.s32 0, %v2250_v50 }
 0x123   : > { %3799 = vmatprep.mubr.msk.f32.mxu1 %vm4452_vm1, %v4451_v2  ;;  %4037 = vmatprep.mubr.msk.f32.mxu0 %vm4452_vm1, %v4451_v2 }
 0x126   : > { %3800 = vmatmul.mubr.msk.f32.gmra.mrb[54].mxu1 %vm405_vm2, %v349_v59  ;;  %4038 = vmatmul.mubr.msk.f32.gmra.mrb[54].mxu0 %vm405_vm2, %v3380_v60  ;;  %v2292_v59 = vadd.s32 16, %v2130_v55  ;;  %v5548_v60 = vpop.permute.xlu0 %2241 }
 0x127   : > { %3802 = vmatprep.mubr.msk.f32.mxu1 %vm4452_vm1, %v4451_v2  ;;  %4040 = vmatprep.mubr.msk.f32.mxu0 %vm4452_vm1, %v4451_v2 }
 0x12a   : > { %3803 = vmatmul.mubr.msk.f32.gmra.mrb[56].mxu1 %vm405_vm2, %v350_v63  ;;  %4041 = vmatmul.mubr.msk.f32.gmra.mrb[56].mxu0 %vm405_vm2, %v3381_v0  ;;  %v2131_v0 = vld [vmem:[%s6552_s3 + $0x1] sm:$0x1] }
 0x12b   : > { %3805 = vmatprep.mubr.msk.f32.mxu1 %vm4452_vm1, %v4451_v2  ;;  %4043 = vmatprep.mubr.msk.f32.mxu0 %vm4452_vm1, %v4451_v2 }
 0x12e   : > { %3806 = vmatmul.mubr.msk.f32.gmra.mrb[58].mxu1 %vm405_vm2, %v351_v5  ;;  %4044 = vmatmul.mubr.msk.f32.gmra.mrb[58].mxu0 %vm405_vm2, %v3382_v1  ;;  %v5555_v5 = vrot.slane %v2130_v55, %v2251_v56  ;;  %v5557_v1 = vrot.slane %v2292_v59, %v2251_v56 }
 0x12f   : > { %3808 = vmatprep.mubr.msk.f32.mxu1 %vm4452_vm1, %v4451_v2  ;;  %4046 = vmatprep.mubr.msk.f32.mxu0 %vm4452_vm1, %v4451_v2 }
 0x130   : > { %vm2253_vm3 = vcmp.ge.s32.totalorder %v5351_v46, %v5555_v5  ;;  %vm2297_vm4 = vcmp.lt.s32.totalorder %v5351_v46, %v5557_v1  ;;  %vm2254_vm7 = vcmp.ge.s32.totalorder %v5363_v51, %v5555_v5  ;;  %vm2298_vm8 = vcmp.lt.s32.totalorder %v5363_v51, %v5557_v1 }
 0x131   : > { %vm2336_vm5 = vmand %vm2253_vm3, %vm2297_vm4  ;;  %vm2255_vm14 = vcmp.ge.s32.totalorder %v5353_v47, %v5555_v5  ;;  %vm2299_vm15 = vcmp.lt.s32.totalorder %v5353_v47, %v5557_v1 }
 0x132   : > { %3809 = vmatmul.mubr.msk.f32.gmra.mrb[60].mxu1 %vm405_vm2, %v352_v8  ;;  %4047 = vmatmul.mubr.msk.f32.gmra.mrb[60].mxu0 %vm405_vm2, %v3383_v9  ;;  %v2574_v8 = vadd.s32 16, %v2131_v0  ;;  %v5563_v9 = vrot.slane %v2131_v0, %v2251_v56  ;;  %vm2337_vm11 = vmand %vm2254_vm7, %vm2298_vm8 }
 0x133   : > { %3811 = vmatprep.mubr.msk.f32.mxu1 %vm4452_vm1, %v4451_v2  ;;  %4049 = vmatprep.mubr.msk.f32.mxu0 %vm4452_vm1, %v4451_v2  ;;  %vm2338_vm3 = vmand %vm2255_vm14, %vm2299_vm15 }
 0x136   : > { %3812 = vmatmul.mubr.msk.f32.gmra.mrb[62].mxu1 %vm405_vm2, %v353_v16  ;;  %4050 = vmatmul.mubr.msk.f32.gmra.mrb[62].mxu0 %vm405_vm2, %v3384_v17  ;;  %v2377_v16 = vpop.permute.xlu0 %2376 }
 0x137   : > { %3814 = vmatprep.mubr.msk.f32.mxu1 %vm4452_vm1, %v4451_v2  ;;  %4052 = vmatprep.mubr.msk.f32.mxu0 %vm4452_vm1, %v4451_v2  ;;  %vm2496_vm6 = vcmp.ge.s32.totalorder %v2377_v16, %v5563_v9 }
 0x138   : > { %vm2535_vm9 = vmand %vm2336_vm5, %vm2496_vm6  ;;  %vm2256_vm5 = vcmp.ge.s32.totalorder %v5365_v52, %v5555_v5  ;;  %vm2300_vm6 = vcmp.lt.s32.totalorder %v5365_v52, %v5557_v1 }
 0x13a   : > { %3815 = vmatmul.mubr.msk.f32.gmra.mrb[64].mxu1 %vm405_vm2, %v354_v20  ;;  %4053 = vmatmul.mubr.msk.f32.gmra.mrb[64].mxu0 %vm405_vm2, %v3385_v21  ;;  %v5566_v20 = vrot.slane %v2574_v8, %v2251_v56 }
 0x13b   : > { %3817 = vmatprep.mubr.msk.f32.mxu1 %vm4452_vm1, %v4451_v2  ;;  %4055 = vmatprep.mubr.msk.f32.mxu0 %vm4452_vm1, %v4451_v2 }
 0x13c   : > { %vm2579_vm10 = vcmp.lt.s32.totalorder %v2377_v16, %v5566_v20 }
 0x13d   : > { %vm2618_vm12 = vmand %vm2535_vm9, %vm2579_vm10 }
 0x13e   : > { %3818 = vmatmul.mubr.msk.f32.gmra.mrb[66].mxu1 %vm405_vm2, %v355_v28  ;;  %4056 = vmatmul.mubr.msk.f32.gmra.mrb[66].mxu0 %vm405_vm2, %v3386_v29  ;;  %vm5597_vm10 = vmand %vm2256_vm5, %vm2300_vm6  ;;  %vm2302_vm5 = vcmp.lt.s32.totalorder %v5385_v58, %v5557_v1 }
 0x13f   : > { %3820 = vmatprep.mubr.msk.f32.mxu1 %vm4452_vm1, %v4451_v2  ;;  %4058 = vmatprep.mubr.msk.f32.mxu0 %vm4452_vm1, %v4451_v2 }
 0x142   : > { %3821 = vmatmul.mubr.msk.f32.gmra.mrb[68].mxu1 %vm405_vm2, %v356_v36  ;;  %4059 = vmatmul.mubr.msk.f32.gmra.mrb[68].mxu0 %vm405_vm2, %v3387_v37  ;;  %v2386_v37 = vpop.permute.xlu0 %2385 }
 0x143   : > { %3823 = vmatprep.mubr.msk.f32.mxu1 %vm4452_vm1, %v4451_v2  ;;  %4061 = vmatprep.mubr.msk.f32.mxu0 %vm4452_vm1, %v4451_v2 }
 0x146   : > { %3824 = vmatmul.mubr.msk.f32.gmra.mrb[70].mxu1 %vm405_vm2, %v357_v40  ;;  %4062 = vmatmul.mubr.msk.f32.gmra.mrb[70].mxu0 %vm405_vm2, %v3388_v41 }
 0x147   : > { %3826 = vmatprep.mubr.msk.f32.mxu1 %vm4452_vm1, %v4451_v2  ;;  %4064 = vmatprep.mubr.msk.f32.mxu0 %vm4452_vm1, %v4451_v2 }
 0x14a   : > { %3827 = vmatmul.mubr.msk.f32.gmra.mrb[72].mxu1 %vm405_vm2, %v358_v48  ;;  %4065 = vmatmul.mubr.msk.f32.gmra.mrb[72].mxu0 %vm405_vm2, %v3389_v3 }
 0x14b   : > { %3829 = vmatprep.mubr.msk.f32.mxu1 %vm4452_vm1, %v4451_v2  ;;  %4067 = vmatprep.mubr.msk.f32.mxu0 %vm4452_vm1, %v4451_v2 }
 0x14e   : > { %3830 = vmatmul.mubr.msk.f32.gmra.mrb[74].mxu1 %vm405_vm2, %v359_v11  ;;  %4068 = vmatmul.mubr.msk.f32.gmra.mrb[74].mxu0 %vm405_vm2, %v3390_v14 }
 0x14f   : > { %3832 = vmatprep.mubr.msk.f32.mxu1 %vm4452_vm1, %v4451_v2  ;;  %4070 = vmatprep.mubr.msk.f32.mxu0 %vm4452_vm1, %v4451_v2  ;;  %v5527_v2 = vpop.permute.xlu1 %2214 }
 0x152   : > { %3833 = vmatmul.mubr.msk.f32.gmra.mrb[76].mxu1 %vm405_vm2, %v360_v15  ;;  %4071 = vmatmul.mubr.msk.f32.gmra.mrb[76].mxu0 %vm405_vm2, %v3391_v18 }
 0x153   : > { %v5531_v35 = vpop.permute.xlu1 %2220 }
 0x157   : > { %v5535_v39 = vpop.permute.xlu1 %2226 }
 0x15b   : > { %v5539_v43 = vpop.permute.xlu1 %2232 }
 0x15f   : > { %v5543_v54 = vpop.permute.xlu1 %2238 }
 0x163   : > { %v5550_v63 = vpop.permute.xlu1 %2244 }
 0x167   : > { %v2380_v17 = vpop.permute.xlu1 %2379 }
 0x168   : > { %vm2497_vm13 = vcmp.ge.s32.totalorder %v2380_v17, %v5563_v9  ;;  %vm2580_vm2 = vcmp.lt.s32.totalorder %v2380_v17, %v5566_v20 }
 0x169   : > { %vm2536_vm1 = vmand %vm2337_vm11, %vm2497_vm13  ;;  %vm2499_vm11 = vcmp.ge.s32.totalorder %v2386_v37, %v5563_v9  ;;  %vm2301_vm13 = vcmp.lt.s32.totalorder %v5383_v57, %v5557_v1 }
 0x16a   : > { %vm2619_vm7 = vmand %vm2536_vm1, %vm2580_vm2  ;;  %vm2582_vm1 = vcmp.lt.s32.totalorder %v2386_v37, %v5566_v20 }
 0x16b   : > { %v2383_v46 = vpop.permute.xlu1 %2382  ;;  %vm5620_vm15 = vmand %vm5597_vm10, %vm2499_vm11  ;;  %vm2259_vm11 = vcmp.ge.s32.totalorder %v5395_v61, %v5555_v5 }
 0x16c   : > { %vm2498_vm4 = vcmp.ge.s32.totalorder %v2383_v46, %v5563_v9  ;;  %vm2581_vm9 = vcmp.lt.s32.totalorder %v2383_v46, %v5566_v20  ;;  %vm2621_vm6 = vmand %vm5620_vm15, %vm2582_vm1 }
 0x16d   : > { %vm5592_vm8 = vmand %vm2338_vm3, %vm2498_vm4  ;;  %vm2258_vm4 = vcmp.ge.s32.totalorder %v5385_v58, %v5555_v5 }
 0x16e   : > { %vm2620_vm14 = vmand %vm5592_vm8, %vm2581_vm9 }
 0x16f   : > { %v2389_v18 = vpop.permute.xlu1 %2388  ;;  %vm5649_vm9 = vmand %vm2258_vm4, %vm2302_vm5  ;;  %vm2304_vm4 = vcmp.lt.s32.totalorder %v5397_v62, %v5557_v1 }
 0x170   : > { %vm2500_vm3 = vcmp.ge.s32.totalorder %v2389_v18, %v5563_v9  ;;  %vm2583_vm8 = vcmp.lt.s32.totalorder %v2389_v18, %v5566_v20 }
 0x173   : > { %v2395_v58 = vpop.permute.xlu1 %2394 }
 0x18d   : > { %v973_v21 = vpop.f32.mrb[0].mxu1  ;;  %v1858_v28 = vpop.f32.mrb[0].mxu0 }
 0x18e   : > { %v4073_v51 = vadd.f32 %v1858_v28, %v973_v21  ;;  %v3720_v29 = vpop.f32.mrb[1].mxu1  ;;  %v3958_v36 = vpop.f32.mrb[1].mxu0 }
 0x190   : > { %v2657_v40 = vsel %vm2618_vm12, %v4073_v51, 0.0  ;;  %vm2257_vm12 = vcmp.ge.s32.totalorder %v5383_v57, %v5555_v5  ;;  %v2392_v57 = vpop.permute.xlu0 %2391 }
 0x191   : > { %2697 = vst.msk [vmem:[%s5582_s8] sm:$0xff] %vm2696_vm0, %v2657_v40  ;;  %v978_v47 = vpop.f32.mrb[2].mxu1  ;;  %v1863_v41 = vpop.f32.mrb[2].mxu0  ;;  %v2821_v14 = vmul.f32 %v2657_v40, %v2657_v40  ;;  %v2736_v52 = vsel %vm2696_vm0, %v2657_v40, 0.0  ;;  %vm5625_vm2 = vmand %vm2257_vm12, %vm2301_vm13  ;;  %vm2501_vm10 = vcmp.ge.s32.totalorder %v2392_v57, %v5563_v9  ;;  %vm2303_vm12 = vcmp.lt.s32.totalorder %v5395_v61, %v5557_v1 }
 0x192   : > { %v4074_v48 = vadd.f32 %v1863_v41, %v978_v47  ;;  %v3723_v3 = vpop.f32.mrb[3].mxu1  ;;  %v3961_v11 = vpop.f32.mrb[3].mxu0  ;;  %vm2584_vm15 = vcmp.lt.s32.totalorder %v2392_v57, %v5566_v20  ;;  %vm5673_vm1 = vmand %vm2259_vm11, %vm2303_vm12  ;;  %vm2305_vm11 = vcmp.lt.s32.totalorder %v5415_v6, %v5557_v1 }
 0x193   : > { %v2860_v28 = vsel %vm2696_vm0, %v2821_v14, 0.0 }
 0x194   : > { %v2658_v49 = vsel %vm2619_vm7, %v4074_v48, 0.0  ;;  %vm5644_vm7 = vmand %vm5625_vm2, %vm2500_vm3  ;;  %v2398_v61 = vpop.permute.xlu0 %2397  ;;  %vm2502_vm2 = vcmp.ge.s32.totalorder %v2395_v58, %v5563_v9  ;;  %vm2260_vm3 = vcmp.ge.s32.totalorder %v5397_v62, %v5555_v5  ;;  %v2401_v62 = vpop.permute.xlu1 %2400 }
 0x195   : > { %2698 = vst.msk [vmem:[%s5582_s8 + $0x8] sm:$0xff] %vm2696_vm0, %v2658_v49  ;;  %v2737_v55 = vsel %vm2696_vm0, %v2658_v49, 0.0  ;;  %v2822_v56 = vmul.f32 %v2658_v49, %v2658_v49  ;;  %v983_v59 = vpop.f32.mrb[4].mxu1  ;;  %v1868_v0 = vpop.f32.mrb[4].mxu0  ;;  %vm2622_vm13 = vmand %vm5644_vm7, %vm2583_vm8  ;;  %vm2585_vm7 = vcmp.lt.s32.totalorder %v2395_v58, %v5566_v20 }
 0x196   : > { %v2738_v8 = vadd.f32 %v2737_v55, %v2736_v52  ;;  %v4075_v16 = vadd.f32 %v1868_v0, %v983_v59  ;;  %v3726_v17 = vpop.f32.mrb[5].mxu1  ;;  %v3964_v21 = vpop.f32.mrb[5].mxu0  ;;  %vm5697_vm8 = vmand %vm2260_vm3, %vm2304_vm4  ;;  %vm2306_vm3 = vcmp.lt.s32.totalorder %v5417_v7, %v5557_v1 }
 0x197   : > { %v2861_v51 = vsel %vm2696_vm0, %v2822_v56, 0.0 }
 0x198   : > { %v2862_v36 = vadd.f32 %v2861_v51, %v2860_v28  ;;  %v2659_v46 = vsel %vm2620_vm14, %v4075_v16, 0.0  ;;  %vm5668_vm14 = vmand %vm5649_vm9, %vm2501_vm10  ;;  %vm2503_vm9 = vcmp.ge.s32.totalorder %v2398_v61, %v5563_v9  ;;  %vm2261_vm10 = vcmp.ge.s32.totalorder %v5415_v6, %v5555_v5  ;;  %v2404_v6 = vpop.permute.xlu0 %2403 }
 0x199   : > { %2699 = vst.msk [vmem:[%s5582_s8 + $0x10] sm:$0xff] %vm2696_vm0, %v2659_v46  ;;  %v2739_v47 = vsel %vm2696_vm0, %v2659_v46, 0.0  ;;  %v2823_v41 = vmul.f32 %v2659_v46, %v2659_v46  ;;  %v988_v48 = vpop.f32.mrb[6].mxu1  ;;  %v1873_v3 = vpop.f32.mrb[6].mxu0  ;;  %vm2623_vm5 = vmand %vm5668_vm14, %vm2584_vm15  ;;  %vm2586_vm14 = vcmp.lt.s32.totalorder %v2398_v61, %v5566_v20 }
 0x19a   : > { %v2740_v11 = vadd.f32 %v2739_v47, %v2738_v8  ;;  %v4076_v14 = vadd.f32 %v1873_v3, %v988_v48  ;;  %v3729_v15 = vpop.f32.mrb[7].mxu1  ;;  %v3967_v49 = vpop.f32.mrb[7].mxu0  ;;  %vm5721_vm15 = vmand %vm2261_vm10, %vm2305_vm11  ;;  %vm2307_vm10 = vcmp.lt.s32.totalorder %v5427_v12, %v5557_v1 }
 0x19b   : > { %v2863_v50 = vsel %vm2696_vm0, %v2823_v41, 0.0 }
 0x19c   : > { %v2864_v55 = vadd.f32 %v2863_v50, %v2862_v36  ;;  %v2660_v56 = vsel %vm2621_vm6, %v4076_v14, 0.0  ;;  %vm5692_vm6 = vmand %vm5673_vm1, %vm2502_vm2  ;;  %vm2504_vm1 = vcmp.ge.s32.totalorder %v2401_v62, %v5563_v9  ;;  %vm2262_vm2 = vcmp.ge.s32.totalorder %v5417_v7, %v5555_v5  ;;  %v2407_v7 = vpop.permute.xlu1 %2406 }
 0x19d   : > { %2700 = vst.msk [vmem:[%s5582_s8 + $0x18] sm:$0xff] %vm2696_vm0, %v2660_v56  ;;  %v2741_v37 = vsel %vm2696_vm0, %v2660_v56, 0.0  ;;  %v2824_v0 = vmul.f32 %v2660_v56, %v2660_v56  ;;  %v993_v8 = vpop.f32.mrb[8].mxu1  ;;  %v1878_v16 = vpop.f32.mrb[8].mxu0  ;;  %vm2624_vm12 = vmand %vm5692_vm6, %vm2585_vm7  ;;  %vm2587_vm6 = vcmp.lt.s32.totalorder %v2401_v62, %v5566_v20 }
 0x19e   : > { %v2742_v17 = vadd.f32 %v2741_v37, %v2740_v11  ;;  %v4077_v21 = vadd.f32 %v1878_v16, %v993_v8  ;;  %v3732_v28 = vpop.f32.mrb[9].mxu1  ;;  %v3970_v51 = vpop.f32.mrb[9].mxu0  ;;  %vm5745_vm7 = vmand %vm2262_vm2, %vm2306_vm3  ;;  %vm2308_vm2 = vcmp.lt.s32.totalorder %v5429_v13, %v5557_v1 }
 0x19f   : > { %v2865_v29 = vsel %vm2696_vm0, %v2824_v0, 0.0 }
 0x1a0   : > { %v2866_v46 = vadd.f32 %v2865_v29, %v2864_v55  ;;  %v2661_v40 = vsel %vm2622_vm13, %v4077_v21, 0.0  ;;  %vm5716_vm13 = vmand %vm5697_vm8, %vm2503_vm9  ;;  %vm2505_vm8 = vcmp.ge.s32.totalorder %v2404_v6, %v5563_v9  ;;  %vm2263_vm9 = vcmp.ge.s32.totalorder %v5427_v12, %v5555_v5  ;;  %v2410_v12 = vpop.permute.xlu0 %2409 }
 0x1a1   : > { %2701 = vst.msk [vmem:[%s5582_s8 + $0x20] sm:$0xff] %vm2696_vm0, %v2661_v40  ;;  %v2743_v18 = vsel %vm2696_vm0, %v2661_v40, 0.0  ;;  %v2825_v41 = vmul.f32 %v2661_v40, %v2661_v40  ;;  %v998_v48 = vpop.f32.mrb[10].mxu1  ;;  %v1883_v3 = vpop.f32.mrb[10].mxu0  ;;  %vm2625_vm4 = vmand %vm5716_vm13, %vm2586_vm14  ;;  %vm2588_vm13 = vcmp.lt.s32.totalorder %v2404_v6, %v5566_v20 }
 0x1a2   : > { %v2744_v11 = vadd.f32 %v2743_v18, %v2742_v17  ;;  %v4078_v14 = vadd.f32 %v1883_v3, %v998_v48  ;;  %v3735_v15 = vpop.f32.mrb[11].mxu1  ;;  %v3973_v49 = vpop.f32.mrb[11].mxu0  ;;  %vm5769_vm14 = vmand %vm2263_vm9, %vm2307_vm10  ;;  %vm2309_vm9 = vcmp.lt.s32.totalorder %v5447_v24, %v5557_v1 }
 0x1a3   : > { %v2867_v50 = vsel %vm2696_vm0, %v2825_v41, 0.0 }
 0x1a4   : > { %v2868_v55 = vadd.f32 %v2867_v50, %v2866_v46  ;;  %v2662_v56 = vsel %vm2623_vm5, %v4078_v14, 0.0  ;;  %vm5740_vm5 = vmand %vm5721_vm15, %vm2504_vm1  ;;  %vm2506_vm15 = vcmp.ge.s32.totalorder %v2407_v7, %v5563_v9  ;;  %vm2264_vm1 = vcmp.ge.s32.totalorder %v5429_v13, %v5555_v5  ;;  %v2413_v13 = vpop.permute.xlu1 %2412 }
 0x1a5   : > { %2702 = vst.msk [vmem:[%s5582_s8 + $0x28] sm:$0xff] %vm2696_vm0, %v2662_v56  ;;  %v2745_v57 = vsel %vm2696_vm0, %v2662_v56, 0.0  ;;  %v2826_v37 = vmul.f32 %v2662_v56, %v2662_v56  ;;  %v1003_v0 = vpop.f32.mrb[12].mxu1  ;;  %v1888_v8 = vpop.f32.mrb[12].mxu0  ;;  %vm2626_vm11 = vmand %vm5740_vm5, %vm2587_vm6  ;;  %vm2589_vm5 = vcmp.lt.s32.totalorder %v2407_v7, %v5566_v20 }
 0x1a6   : > { %v2746_v16 = vadd.f32 %v2745_v57, %v2744_v11  ;;  %v4079_v17 = vadd.f32 %v1888_v8, %v1003_v0  ;;  %v3738_v21 = vpop.f32.mrb[13].mxu1  ;;  %v3976_v28 = vpop.f32.mrb[13].mxu0  ;;  %vm5793_vm6 = vmand %vm2264_vm1, %vm2308_vm2  ;;  %vm2310_vm1 = vcmp.lt.s32.totalorder %v5449_v25, %v5557_v1 }
 0x1a7   : > { %v2869_v51 = vsel %vm2696_vm0, %v2826_v37, 0.0 }
 0x1a8   : > { %v2870_v36 = vadd.f32 %v2869_v51, %v2868_v55  ;;  %v2663_v46 = vsel %vm2624_vm12, %v4079_v17, 0.0  ;;  %vm5764_vm12 = vmand %vm5745_vm7, %vm2505_vm8  ;;  %vm2507_vm7 = vcmp.ge.s32.totalorder %v2410_v12, %v5563_v9  ;;  %vm2265_vm8 = vcmp.ge.s32.totalorder %v5447_v24, %v5555_v5  ;;  %v2416_v24 = vpop.permute.xlu0 %2415 }
 0x1a9   : > { %2703 = vst.msk [vmem:[%s5582_s8 + $0x30] sm:$0xff] %vm2696_vm0, %v2663_v46  ;;  %v2747_v58 = vsel %vm2696_vm0, %v2663_v46, 0.0  ;;  %v2827_v47 = vmul.f32 %v2663_v46, %v2663_v46  ;;  %v1008_v18 = vpop.f32.mrb[14].mxu1  ;;  %v1893_v41 = vpop.f32.mrb[14].mxu0  ;;  %vm2627_vm3 = vmand %vm5764_vm12, %vm2588_vm13  ;;  %vm2590_vm12 = vcmp.lt.s32.totalorder %v2410_v12, %v5566_v20 }
 0x1aa   : > { %v2748_v48 = vadd.f32 %v2747_v58, %v2746_v16  ;;  %v4080_v3 = vadd.f32 %v1893_v41, %v1008_v18  ;;  %v3741_v11 = vpop.f32.mrb[15].mxu1  ;;  %v3979_v14 = vpop.f32.mrb[15].mxu0  ;;  %vm5817_vm13 = vmand %vm2265_vm8, %vm2309_vm9  ;;  %vm2311_vm8 = vcmp.lt.s32.totalorder %v5459_v32, %v5557_v1 }
 0x1ab   : > { %v2871_v15 = vsel %vm2696_vm0, %v2827_v47, 0.0 }
 0x1ac   : > { %v2872_v50 = vadd.f32 %v2871_v15, %v2870_v36  ;;  %v2664_v52 = vsel %vm2625_vm4, %v4080_v3, 0.0  ;;  %vm5788_vm4 = vmand %vm5769_vm14, %vm2506_vm15  ;;  %vm2508_vm14 = vcmp.ge.s32.totalorder %v2413_v13, %v5563_v9  ;;  %vm2266_vm15 = vcmp.ge.s32.totalorder %v5449_v25, %v5555_v5  ;;  %v2419_v25 = vpop.permute.xlu1 %2418 }
 0x1ad   : > { %2704 = vst.msk [vmem:[%s5582_s8 + $0x38] sm:$0xff] %vm2696_vm0, %v2664_v52  ;;  %v2749_v61 = vsel %vm2696_vm0, %v2664_v52, 0.0  ;;  %v2828_v56 = vmul.f32 %v2664_v52, %v2664_v52  ;;  %v1013_v59 = vpop.f32.mrb[16].mxu1  ;;  %v1898_v57 = vpop.f32.mrb[16].mxu0  ;;  %vm2628_vm10 = vmand %vm5788_vm4, %vm2589_vm5  ;;  %vm2591_vm4 = vcmp.lt.s32.totalorder %v2413_v13, %v5566_v20 }
 0x1ae   : > { %v2750_v37 = vadd.f32 %v2749_v61, %v2748_v48  ;;  %v4081_v0 = vadd.f32 %v1898_v57, %v1013_v59  ;;  %v3744_v8 = vpop.f32.mrb[17].mxu1  ;;  %v3982_v16 = vpop.f32.mrb[17].mxu0  ;;  %vm5841_vm5 = vmand %vm2266_vm15, %vm2310_vm1  ;;  %vm2312_vm15 = vcmp.lt.s32.totalorder %v5461_v33, %v5557_v1 }
 0x1af   : > { %v2873_v17 = vsel %vm2696_vm0, %v2828_v56, 0.0 }
 0x1b0   : > { %v2874_v28 = vadd.f32 %v2873_v17, %v2872_v50  ;;  %v2665_v51 = vsel %vm2626_vm11, %v4081_v0, 0.0  ;;  %vm5812_vm11 = vmand %vm5793_vm6, %vm2507_vm7  ;;  %vm2509_vm6 = vcmp.ge.s32.totalorder %v2416_v24, %v5563_v9  ;;  %vm2267_vm7 = vcmp.ge.s32.totalorder %v5459_v32, %v5555_v5  ;;  %v2422_v32 = vpop.permute.xlu0 %2421 }
 0x1b1   : > { %2705 = vst.msk [vmem:[%s5582_s8 + $0x40] sm:$0xff] %vm2696_vm0, %v2665_v51  ;;  %v2751_v62 = vsel %vm2696_vm0, %v2665_v51, 0.0  ;;  %v2829_v36 = vmul.f32 %v2665_v51, %v2665_v51  ;;  %v1018_v46 = vpop.f32.mrb[18].mxu1  ;;  %v1903_v40 = vpop.f32.mrb[18].mxu0  ;;  %vm2629_vm2 = vmand %vm5812_vm11, %vm2590_vm12  ;;  %vm2592_vm11 = vcmp.lt.s32.totalorder %v2416_v24, %v5566_v20 }
 0x1b2   : > { %v2752_v58 = vadd.f32 %v2751_v62, %v2750_v37  ;;  %v4082_v47 = vadd.f32 %v1903_v40, %v1018_v46  ;;  %v3747_v18 = vpop.f32.mrb[19].mxu1  ;;  %v3985_v41 = vpop.f32.mrb[19].mxu0  ;;  %vm5865_vm12 = vmand %vm2267_vm7, %vm2311_vm8  ;;  %vm2313_vm7 = vcmp.lt.s32.totalorder %v5479_v44, %v5557_v1 }
 0x1b3   : > { %v2875_v48 = vsel %vm2696_vm0, %v2829_v36, 0.0 }
 0x1b4   : > { %v2876_v11 = vadd.f32 %v2875_v48, %v2874_v28  ;;  %v2666_v14 = vsel %vm2627_vm3, %v4082_v47, 0.0  ;;  %vm5836_vm3 = vmand %vm5817_vm13, %vm2508_vm14  ;;  %vm2510_vm13 = vcmp.ge.s32.totalorder %v2419_v25, %v5563_v9  ;;  %vm2268_vm14 = vcmp.ge.s32.totalorder %v5461_v33, %v5555_v5  ;;  %v2425_v33 = vpop.permute.xlu1 %2424 }
 0x1b5   : > { %2706 = vst.msk [vmem:[%s5582_s8 + $0x48] sm:$0xff] %vm2696_vm0, %v2666_v14  ;;  %v2753_v6 = vsel %vm2696_vm0, %v2666_v14, 0.0  ;;  %v2830_v49 = vmul.f32 %v2666_v14, %v2666_v14  ;;  %v1023_v50 = vpop.f32.mrb[20].mxu1  ;;  %v1908_v52 = vpop.f32.mrb[20].mxu0  ;;  %vm2630_vm9 = vmand %vm5836_vm3, %vm2591_vm4  ;;  %vm2593_vm3 = vcmp.lt.s32.totalorder %v2419_v25, %v5566_v20 }
 0x1b6   : > { %v2754_v55 = vadd.f32 %v2753_v6, %v2752_v58  ;;  %v4083_v61 = vadd.f32 %v1908_v52, %v1023_v50  ;;  %v3750_v56 = vpop.f32.mrb[21].mxu1  ;;  %v3988_v59 = vpop.f32.mrb[21].mxu0  ;;  %vm5889_vm4 = vmand %vm2268_vm14, %vm2312_vm15  ;;  %vm2314_vm14 = vcmp.lt.s32.totalorder %v5481_v45, %v5557_v1 }
 0x1b7   : > { %v2877_v57 = vsel %vm2696_vm0, %v2830_v49, 0.0 }
 0x1b8   : > { %v2878_v0 = vadd.f32 %v2877_v57, %v2876_v11  ;;  %v2667_v8 = vsel %vm2628_vm10, %v4083_v61, 0.0  ;;  %vm5860_vm10 = vmand %vm5841_vm5, %vm2509_vm6  ;;  %vm2511_vm5 = vcmp.ge.s32.totalorder %v2422_v32, %v5563_v9  ;;  %vm2269_vm6 = vcmp.ge.s32.totalorder %v5479_v44, %v5555_v5  ;;  %v2428_v44 = vpop.permute.xlu0 %2427 }
 0x1b9   : > { %2707 = vst.msk [vmem:[%s5582_s8 + $0x50] sm:$0xff] %vm2696_vm0, %v2667_v8  ;;  %v2755_v7 = vsel %vm2696_vm0, %v2667_v8, 0.0  ;;  %v2831_v17 = vmul.f32 %v2667_v8, %v2667_v8  ;;  %v1028_v21 = vpop.f32.mrb[22].mxu1  ;;  %v1913_v28 = vpop.f32.mrb[22].mxu0  ;;  %vm2631_vm1 = vmand %vm5860_vm10, %vm2592_vm11  ;;  %vm2594_vm10 = vcmp.lt.s32.totalorder %v2422_v32, %v5566_v20 }
 0x1ba   : > { %v2756_v51 = vadd.f32 %v2755_v7, %v2754_v55  ;;  %v4084_v29 = vadd.f32 %v1913_v28, %v1028_v21  ;;  %v3753_v62 = vpop.f32.mrb[23].mxu1  ;;  %v3991_v36 = vpop.f32.mrb[23].mxu0  ;;  %vm5913_vm11 = vmand %vm2269_vm6, %vm2313_vm7  ;;  %vm2315_vm6 = vcmp.lt.s32.totalorder %v5491_v10, %v5557_v1 }
 0x1bb   : > { %v2879_v46 = vsel %vm2696_vm0, %v2831_v17, 0.0 }
 0x1bc   : > { %v2880_v58 = vadd.f32 %v2879_v46, %v2878_v0  ;;  %v2668_v47 = vsel %vm2629_vm2, %v4084_v29, 0.0  ;;  %vm5884_vm2 = vmand %vm5865_vm12, %vm2510_vm13  ;;  %vm2512_vm12 = vcmp.ge.s32.totalorder %v2425_v33, %v5563_v9  ;;  %vm2270_vm13 = vcmp.ge.s32.totalorder %v5481_v45, %v5555_v5  ;;  %v2431_v45 = vpop.permute.xlu1 %2430 }
 0x1bd   : > { %2708 = vst.msk [vmem:[%s5582_s8 + $0x58] sm:$0xff] %vm2696_vm0, %v2668_v47  ;;  %v2757_v12 = vsel %vm2696_vm0, %v2668_v47, 0.0  ;;  %v2832_v41 = vmul.f32 %v2668_v47, %v2668_v47  ;;  %v1033_v48 = vpop.f32.mrb[24].mxu1  ;;  %v1918_v3 = vpop.f32.mrb[24].mxu0  ;;  %vm2632_vm8 = vmand %vm5884_vm2, %vm2593_vm3  ;;  %vm2595_vm2 = vcmp.lt.s32.totalorder %v2425_v33, %v5566_v20 }
 0x1be   : > { %v2758_v11 = vadd.f32 %v2757_v12, %v2756_v51  ;;  %v4085_v14 = vadd.f32 %v1918_v3, %v1033_v48  ;;  %v3756_v15 = vpop.f32.mrb[25].mxu1  ;;  %v3994_v6 = vpop.f32.mrb[25].mxu0  ;;  %vm5937_vm3 = vmand %vm2270_vm13, %vm2314_vm14  ;;  %vm2316_vm13 = vcmp.lt.s32.totalorder %v5493_v4, %v5557_v1 }
 0x1bf   : > { %v2881_v49 = vsel %vm2696_vm0, %v2832_v41, 0.0 }
 0x1c0   : > { %v2882_v52 = vadd.f32 %v2881_v49, %v2880_v58  ;;  %v2669_v55 = vsel %vm2630_vm9, %v4085_v14, 0.0  ;;  %vm5908_vm9 = vmand %vm5889_vm4, %vm2511_vm5  ;;  %vm2513_vm4 = vcmp.ge.s32.totalorder %v2428_v44, %v5563_v9  ;;  %vm2271_vm5 = vcmp.ge.s32.totalorder %v5491_v10, %v5555_v5  ;;  %v2434_v10 = vpop.permute.xlu0 %2433 }
 0x1c1   : > { %2709 = vst.msk [vmem:[%s5582_s8 + $0x60] sm:$0xff] %vm2696_vm0, %v2669_v55  ;;  %v2759_v13 = vsel %vm2696_vm0, %v2669_v55, 0.0  ;;  %v2833_v56 = vmul.f32 %v2669_v55, %v2669_v55  ;;  %v1038_v59 = vpop.f32.mrb[26].mxu1  ;;  %v1923_v57 = vpop.f32.mrb[26].mxu0  ;;  %vm2633_vm15 = vmand %vm5908_vm9, %vm2594_vm10  ;;  %vm2596_vm9 = vcmp.lt.s32.totalorder %v2428_v44, %v5566_v20 }
 0x1c2   : > { %v2760_v37 = vadd.f32 %v2759_v13, %v2758_v11  ;;  %v4086_v0 = vadd.f32 %v1923_v57, %v1038_v59  ;;  %v3759_v8 = vpop.f32.mrb[27].mxu1  ;;  %v3997_v16 = vpop.f32.mrb[27].mxu0  ;;  %vm5961_vm10 = vmand %vm2271_vm5, %vm2315_vm6  ;;  %vm2317_vm5 = vcmp.lt.s32.totalorder %v5511_v19, %v5557_v1 }
 0x1c3   : > { %v2883_v7 = vsel %vm2696_vm0, %v2833_v56, 0.0 }
 0x1c4   : > { %v2884_v21 = vadd.f32 %v2883_v7, %v2882_v52  ;;  %v2670_v28 = vsel %vm2631_vm1, %v4086_v0, 0.0  ;;  %vm5932_vm1 = vmand %vm5913_vm11, %vm2512_vm12  ;;  %vm2514_vm11 = vcmp.ge.s32.totalorder %v2431_v45, %v5563_v9  ;;  %vm2272_vm12 = vcmp.ge.s32.totalorder %v5493_v4, %v5555_v5  ;;  %v2437_v4 = vpop.permute.xlu1 %2436 }
 0x1c5   : > { %2710 = vst.msk [vmem:[%s5582_s8 + $0x68] sm:$0xff] %vm2696_vm0, %v2670_v28  ;;  %v2761_v24 = vsel %vm2696_vm0, %v2670_v28, 0.0  ;;  %v2834_v29 = vmul.f32 %v2670_v28, %v2670_v28  ;;  %v1043_v62 = vpop.f32.mrb[28].mxu1  ;;  %v1928_v36 = vpop.f32.mrb[28].mxu0  ;;  %vm2634_vm7 = vmand %vm5932_vm1, %vm2595_vm2  ;;  %vm2597_vm1 = vcmp.lt.s32.totalorder %v2431_v45, %v5566_v20 }
 0x1c6   : > { %v2762_v46 = vadd.f32 %v2761_v24, %v2760_v37  ;;  %v4087_v40 = vadd.f32 %v1928_v36, %v1043_v62  ;;  %v3762_v58 = vpop.f32.mrb[29].mxu1  ;;  %v4000_v47 = vpop.f32.mrb[29].mxu0  ;;  %vm5985_vm2 = vmand %vm2272_vm12, %vm2316_vm13  ;;  %vm2318_vm12 = vcmp.lt.s32.totalorder %v5513_v22, %v5557_v1 }
 0x1c7   : > { %v2885_v18 = vsel %vm2696_vm0, %v2834_v29, 0.0 }
 0x1c8   : > { %v2886_v41 = vadd.f32 %v2885_v18, %v2884_v21  ;;  %v2671_v48 = vsel %vm2632_vm8, %v4087_v40, 0.0  ;;  %vm5956_vm8 = vmand %vm5937_vm3, %vm2513_vm4  ;;  %vm2515_vm3 = vcmp.ge.s32.totalorder %v2434_v10, %v5563_v9  ;;  %vm2273_vm4 = vcmp.ge.s32.totalorder %v5511_v19, %v5555_v5  ;;  %v2440_v19 = vpop.permute.xlu0 %2439 }
 0x1c9   : > { %2711 = vst.msk [vmem:[%s5582_s8 + $0x70] sm:$0xff] %vm2696_vm0, %v2671_v48  ;;  %v2763_v25 = vsel %vm2696_vm0, %v2671_v48, 0.0  ;;  %v2835_v11 = vmul.f32 %v2671_v48, %v2671_v48  ;;  %v1048_v14 = vpop.f32.mrb[30].mxu1  ;;  %v1933_v15 = vpop.f32.mrb[30].mxu0  ;;  %vm2635_vm14 = vmand %vm5956_vm8, %vm2596_vm9  ;;  %vm2598_vm8 = vcmp.lt.s32.totalorder %v2434_v10, %v5566_v20 }
 0x1ca   : > { %v2764_v6 = vadd.f32 %v2763_v25, %v2762_v46  ;;  %v4088_v49 = vadd.f32 %v1933_v15, %v1048_v14  ;;  %v3765_v50 = vpop.f32.mrb[31].mxu1  ;;  %v4003_v52 = vpop.f32.mrb[31].mxu0  ;;  %vm6009_vm9 = vmand %vm2273_vm4, %vm2317_vm5  ;;  %vm2319_vm4 = vcmp.lt.s32.totalorder %v5517_v23, %v5557_v1 }
 0x1cb   : > { %v2887_v55 = vsel %vm2696_vm0, %v2835_v11, 0.0 }
 0x1cc   : > { %v2888_v13 = vadd.f32 %v2887_v55, %v2886_v41  ;;  %v2672_v56 = vsel %vm2633_vm15, %v4088_v49, 0.0  ;;  %vm5980_vm15 = vmand %vm5961_vm10, %vm2514_vm11  ;;  %vm2516_vm10 = vcmp.ge.s32.totalorder %v2437_v4, %v5563_v9  ;;  %vm2274_vm11 = vcmp.ge.s32.totalorder %v5513_v22, %v5555_v5  ;;  %v2443_v22 = vpop.permute.xlu1 %2442 }
 0x1cd   : > { %2712 = vst.msk [vmem:[%s5582_s8 + $0x78] sm:$0xff] %vm2696_vm0, %v2672_v56  ;;  %v2765_v32 = vsel %vm2696_vm0, %v2672_v56, 0.0  ;;  %v2836_v57 = vmul.f32 %v2672_v56, %v2672_v56  ;;  %v1053_v37 = vpop.f32.mrb[32].mxu1  ;;  %v1938_v0 = vpop.f32.mrb[32].mxu0  ;;  %vm2636_vm6 = vmand %vm5980_vm15, %vm2597_vm1  ;;  %vm2599_vm15 = vcmp.lt.s32.totalorder %v2437_v4, %v5566_v20 }
 0x1ce   : > { %v2766_v8 = vadd.f32 %v2765_v32, %v2764_v6  ;;  %v4089_v16 = vadd.f32 %v1938_v0, %v1053_v37  ;;  %v3768_v7 = vpop.f32.mrb[33].mxu1  ;;  %v4006_v17 = vpop.f32.mrb[33].mxu0  ;;  %vm6033_vm1 = vmand %vm2274_vm11, %vm2318_vm12  ;;  %vm2320_vm11 = vcmp.lt.s32.totalorder %v5519_v26, %v5557_v1 }
 0x1cf   : > { %v2889_v21 = vsel %vm2696_vm0, %v2836_v57, 0.0 }
 0x1d0   : > { %v2890_v51 = vadd.f32 %v2889_v21, %v2888_v13  ;;  %v2673_v24 = vsel %vm2634_vm7, %v4089_v16, 0.0  ;;  %vm6004_vm7 = vmand %vm5985_vm2, %vm2515_vm3  ;;  %vm2517_vm2 = vcmp.ge.s32.totalorder %v2440_v19, %v5563_v9  ;;  %vm2275_vm3 = vcmp.ge.s32.totalorder %v5517_v23, %v5555_v5  ;;  %v2446_v23 = vpop.permute.xlu0 %2445 }
 0x1d1   : > { %2713 = vst.msk [vmem:[%s5582_s8 + $0x80] sm:$0xff] %vm2696_vm0, %v2673_v24  ;;  %v2767_v33 = vsel %vm2696_vm0, %v2673_v24, 0.0  ;;  %v2837_v62 = vmul.f32 %v2673_v24, %v2673_v24  ;;  %v1058_v36 = vpop.f32.mrb[34].mxu1  ;;  %v1943_v46 = vpop.f32.mrb[34].mxu0  ;;  %vm2637_vm13 = vmand %vm6004_vm7, %vm2598_vm8  ;;  %vm2600_vm7 = vcmp.lt.s32.totalorder %v2440_v19, %v5566_v20 }
 0x1d2   : > { %v2768_v40 = vadd.f32 %v2767_v33, %v2766_v8  ;;  %v4090_v58 = vadd.f32 %v1943_v46, %v1058_v36  ;;  %v3771_v47 = vpop.f32.mrb[35].mxu1  ;;  %v4009_v18 = vpop.f32.mrb[35].mxu0  ;;  %vm6057_vm8 = vmand %vm2275_vm3, %vm2319_vm4  ;;  %vm2321_vm3 = vcmp.lt.s32.totalorder %v5521_v27, %v5557_v1 }
 0x1d3   : > { %v2891_v12 = vsel %vm2696_vm0, %v2837_v62, 0.0 }
 0x1d4   : > { %v2892_v48 = vadd.f32 %v2891_v12, %v2890_v51  ;;  %v2674_v3 = vsel %vm2635_vm14, %v4090_v58, 0.0  ;;  %vm6028_vm14 = vmand %vm6009_vm9, %vm2516_vm10  ;;  %vm2518_vm9 = vcmp.ge.s32.totalorder %v2443_v22, %v5563_v9  ;;  %vm2276_vm10 = vcmp.ge.s32.totalorder %v5519_v26, %v5555_v5  ;;  %v2449_v26 = vpop.permute.xlu1 %2448 }
 0x1d5   : > { %2714 = vst.msk [vmem:[%s5582_s8 + $0x88] sm:$0xff] %vm2696_vm0, %v2674_v3  ;;  %v2769_v44 = vsel %vm2696_vm0, %v2674_v3, 0.0  ;;  %v2838_v11 = vmul.f32 %v2674_v3, %v2674_v3  ;;  %v1063_v14 = vpop.f32.mrb[36].mxu1  ;;  %v1948_v15 = vpop.f32.mrb[36].mxu0  ;;  %vm2638_vm5 = vmand %vm6028_vm14, %vm2599_vm15  ;;  %vm2601_vm14 = vcmp.lt.s32.totalorder %v2443_v22, %v5566_v20 }
 0x1d6   : > { %v2770_v6 = vadd.f32 %v2769_v44, %v2768_v40  ;;  %v4091_v49 = vadd.f32 %v1948_v15, %v1063_v14  ;;  %v3774_v50 = vpop.f32.mrb[37].mxu1  ;;  %v4012_v52 = vpop.f32.mrb[37].mxu0  ;;  %vm6081_vm15 = vmand %vm2276_vm10, %vm2320_vm11  ;;  %vm2322_vm10 = vcmp.lt.s32.totalorder %v5523_v30, %v5557_v1 }
 0x1d7   : > { %v2893_v55 = vsel %vm2696_vm0, %v2838_v11, 0.0 }
 0x1d8   : > { %v2894_v13 = vadd.f32 %v2893_v55, %v2892_v48  ;;  %v2675_v56 = vsel %vm2636_vm6, %v4091_v49, 0.0  ;;  %vm6052_vm6 = vmand %vm6033_vm1, %vm2517_vm2  ;;  %vm2519_vm1 = vcmp.ge.s32.totalorder %v2446_v23, %v5563_v9  ;;  %vm2277_vm2 = vcmp.ge.s32.totalorder %v5521_v27, %v5555_v5  ;;  %v2452_v27 = vpop.permute.xlu0 %2451 }
 0x1d9   : > { %2715 = vst.msk [vmem:[%s5582_s8 + $0x90] sm:$0xff] %vm2696_vm0, %v2675_v56  ;;  %v2771_v45 = vsel %vm2696_vm0, %v2675_v56, 0.0  ;;  %v2839_v32 = vmul.f32 %v2675_v56, %v2675_v56  ;;  %v1068_v57 = vpop.f32.mrb[38].mxu1  ;;  %v1953_v37 = vpop.f32.mrb[38].mxu0  ;;  %vm2639_vm12 = vmand %vm6052_vm6, %vm2600_vm7  ;;  %vm2602_vm6 = vcmp.lt.s32.totalorder %v2446_v23, %v5566_v20 }
 0x1da   : > { %v2772_v0 = vadd.f32 %v2771_v45, %v2770_v6  ;;  %v4092_v8 = vadd.f32 %v1953_v37, %v1068_v57  ;;  %v3777_v16 = vpop.f32.mrb[39].mxu1  ;;  %v4015_v7 = vpop.f32.mrb[39].mxu0  ;;  %vm6105_vm7 = vmand %vm2277_vm2, %vm2321_vm3  ;;  %vm2323_vm2 = vcmp.lt.s32.totalorder %v5525_v31, %v5557_v1 }
 0x1db   : > { %v2895_v17 = vsel %vm2696_vm0, %v2839_v32, 0.0 }
 0x1dc   : > { %v2896_v28 = vadd.f32 %v2895_v17, %v2894_v13  ;;  %v2676_v51 = vsel %vm2637_vm13, %v4092_v8, 0.0  ;;  %vm6076_vm13 = vmand %vm6057_vm8, %vm2518_vm9  ;;  %vm2520_vm8 = vcmp.ge.s32.totalorder %v2449_v26, %v5563_v9  ;;  %vm2278_vm9 = vcmp.ge.s32.totalorder %v5523_v30, %v5555_v5  ;;  %v2455_v30 = vpop.permute.xlu1 %2454 }
 0x1dd   : > { %2716 = vst.msk [vmem:[%s5582_s8 + $0x98] sm:$0xff] %vm2696_vm0, %v2676_v51  ;;  %v2773_v10 = vsel %vm2696_vm0, %v2676_v51, 0.0  ;;  %v2840_v29 = vmul.f32 %v2676_v51, %v2676_v51  ;;  %v1073_v33 = vpop.f32.mrb[40].mxu1  ;;  %v1958_v62 = vpop.f32.mrb[40].mxu0  ;;  %vm2640_vm4 = vmand %vm6076_vm13, %vm2601_vm14  ;;  %vm2603_vm13 = vcmp.lt.s32.totalorder %v2449_v26, %v5566_v20 }
 0x1de   : > { %v2774_v36 = vadd.f32 %v2773_v10, %v2772_v0  ;;  %v4093_v46 = vadd.f32 %v1958_v62, %v1073_v33  ;;  %v3780_v40 = vpop.f32.mrb[41].mxu1  ;;  %v4018_v58 = vpop.f32.mrb[41].mxu0  ;;  %vm6129_vm14 = vmand %vm2278_vm9, %vm2322_vm10  ;;  %vm2324_vm9 = vcmp.lt.s32.totalorder %v5527_v2, %v5557_v1 }
 0x1df   : > { %v2897_v47 = vsel %vm2696_vm0, %v2840_v29, 0.0 }
 0x1e0   : > { %v2898_v12 = vadd.f32 %v2897_v47, %v2896_v28  ;;  %v2677_v41 = vsel %vm2638_vm5, %v4093_v46, 0.0  ;;  %vm6100_vm5 = vmand %vm6081_vm15, %vm2519_vm1  ;;  %vm2521_vm15 = vcmp.ge.s32.totalorder %v2452_v27, %v5563_v9  ;;  %vm2279_vm1 = vcmp.ge.s32.totalorder %v5525_v31, %v5555_v5  ;;  %v2458_v31 = vpop.permute.xlu0 %2457 }
 0x1e1   : > { %2717 = vst.msk [vmem:[%s5582_s8 + $0xa0] sm:$0xff] %vm2696_vm0, %v2677_v41  ;;  %v2775_v4 = vsel %vm2696_vm0, %v2677_v41, 0.0  ;;  %v2841_v3 = vmul.f32 %v2677_v41, %v2677_v41  ;;  %v1078_v25 = vpop.f32.mrb[42].mxu1  ;;  %v1963_v44 = vpop.f32.mrb[42].mxu0  ;;  %vm2641_vm11 = vmand %vm6100_vm5, %vm2602_vm6  ;;  %vm2604_vm5 = vcmp.lt.s32.totalorder %v2452_v27, %v5566_v20 }
 0x1e2   : > { %v2776_v11 = vadd.f32 %v2775_v4, %v2774_v36  ;;  %v4094_v14 = vadd.f32 %v1963_v44, %v1078_v25  ;;  %v3783_v15 = vpop.f32.mrb[43].mxu1  ;;  %v4021_v6 = vpop.f32.mrb[43].mxu0  ;;  %vm6153_vm6 = vmand %vm2279_vm1, %vm2323_vm2  ;;  %vm2325_vm1 = vcmp.lt.s32.totalorder %v5529_v34, %v5557_v1 }
 0x1e3   : > { %v2899_v49 = vsel %vm2696_vm0, %v2841_v3, 0.0 }
 0x1e4   : > { %v2900_v52 = vadd.f32 %v2899_v49, %v2898_v12  ;;  %v2678_v55 = vsel %vm2639_vm12, %v4094_v14, 0.0  ;;  %vm6124_vm12 = vmand %vm6105_vm7, %vm2520_vm8  ;;  %vm2522_vm7 = vcmp.ge.s32.totalorder %v2455_v30, %v5563_v9  ;;  %vm2280_vm8 = vcmp.ge.s32.totalorder %v5527_v2, %v5555_v5  ;;  %v2461_v2 = vpop.permute.xlu1 %2460 }
 0x1e5   : > { %2718 = vst.msk [vmem:[%s5582_s8 + $0xa8] sm:$0xff] %vm2696_vm0, %v2678_v55  ;;  %v2777_v19 = vsel %vm2696_vm0, %v2678_v55, 0.0  ;;  %v2842_v13 = vmul.f32 %v2678_v55, %v2678_v55  ;;  %v1083_v56 = vpop.f32.mrb[44].mxu1  ;;  %v1968_v59 = vpop.f32.mrb[44].mxu0  ;;  %vm2642_vm3 = vmand %vm6124_vm12, %vm2603_vm13  ;;  %vm2605_vm12 = vcmp.lt.s32.totalorder %v2455_v30, %v5566_v20 }
 0x1e6   : > { %v2778_v45 = vadd.f32 %v2777_v19, %v2776_v11  ;;  %v4095_v32 = vadd.f32 %v1968_v59, %v1083_v56  ;;  %v3786_v57 = vpop.f32.mrb[45].mxu1  ;;  %v4024_v37 = vpop.f32.mrb[45].mxu0  ;;  %vm6177_vm13 = vmand %vm2280_vm8, %vm2324_vm9  ;;  %vm2326_vm8 = vcmp.lt.s32.totalorder %v5531_v35, %v5557_v1 }
 0x1e7   : > { %v2901_v0 = vsel %vm2696_vm0, %v2842_v13, 0.0 }
 0x1e8   : > { %v2902_v16 = vadd.f32 %v2901_v0, %v2900_v52  ;;  %v2679_v7 = vsel %vm2640_vm4, %v4095_v32, 0.0  ;;  %vm6148_vm4 = vmand %vm6129_vm14, %vm2521_vm15  ;;  %vm2523_vm14 = vcmp.ge.s32.totalorder %v2458_v31, %v5563_v9  ;;  %vm2281_vm15 = vcmp.ge.s32.totalorder %v5529_v34, %v5555_v5  ;;  %v2464_v34 = vpop.permute.xlu0 %2463 }
 0x1e9   : > { %2719 = vst.msk [vmem:[%s5582_s8 + $0xb0] sm:$0xff] %vm2696_vm0, %v2679_v7  ;;  %v2779_v21 = vsel %vm2696_vm0, %v2679_v7, 0.0  ;;  %v2843_v22 = vmul.f32 %v2679_v7, %v2679_v7  ;;  %v1088_v28 = vpop.f32.mrb[46].mxu1  ;;  %v1973_v51 = vpop.f32.mrb[46].mxu0  ;;  %vm2643_vm10 = vmand %vm6148_vm4, %vm2604_vm5  ;;  %vm2606_vm4 = vcmp.lt.s32.totalorder %v2458_v31, %v5566_v20 }
 0x1ea   : > { %v2780_v24 = vadd.f32 %v2779_v21, %v2778_v45  ;;  %v4096_v10 = vadd.f32 %v1973_v51, %v1088_v28  ;;  %v3789_v29 = vpop.f32.mrb[47].mxu1  ;;  %v4027_v33 = vpop.f32.mrb[47].mxu0  ;;  %vm6201_vm5 = vmand %vm2281_vm15, %vm2325_vm1  ;;  %vm2327_vm15 = vcmp.lt.s32.totalorder %v5533_v38, %v5557_v1 }
 0x1eb   : > { %v2903_v62 = vsel %vm2696_vm0, %v2843_v22, 0.0 }
 0x1ec   : > { %v2904_v46 = vadd.f32 %v2903_v62, %v2902_v16  ;;  %v2680_v40 = vsel %vm2641_vm11, %v4096_v10, 0.0  ;;  %vm6172_vm11 = vmand %vm6153_vm6, %vm2522_vm7  ;;  %vm2524_vm6 = vcmp.ge.s32.totalorder %v2461_v2, %v5563_v9  ;;  %vm2282_vm7 = vcmp.ge.s32.totalorder %v5531_v35, %v5555_v5  ;;  %v2467_v35 = vpop.permute.xlu1 %2466 }
 0x1ed   : > { %2720 = vst.msk [vmem:[%s5582_s8 + $0xb8] sm:$0xff] %vm2696_vm0, %v2680_v40  ;;  %v2781_v47 = vsel %vm2696_vm0, %v2680_v40, 0.0  ;;  %v2844_v18 = vmul.f32 %v2680_v40, %v2680_v40  ;;  %v1093_v23 = vpop.f32.mrb[48].mxu1  ;;  %v1978_v12 = vpop.f32.mrb[48].mxu0  ;;  %vm2644_vm2 = vmand %vm6172_vm11, %vm2605_vm12  ;;  %vm2607_vm11 = vcmp.lt.s32.totalorder %v2461_v2, %v5566_v20 }
 0x1ee   : > { %v2782_v41 = vadd.f32 %v2781_v47, %v2780_v24  ;;  %v4097_v48 = vadd.f32 %v1978_v12, %v1093_v23  ;;  %v3792_v4 = vpop.f32.mrb[49].mxu1  ;;  %v4030_v3 = vpop.f32.mrb[49].mxu0  ;;  %vm6225_vm12 = vmand %vm2282_vm7, %vm2326_vm8  ;;  %vm2328_vm7 = vcmp.lt.s32.totalorder %v5535_v39, %v5557_v1 }
 0x1ef   : > { %v2905_v25 = vsel %vm2696_vm0, %v2844_v18, 0.0 }
 0x1f0   : > { %v2906_v11 = vadd.f32 %v2905_v25, %v2904_v46  ;;  %v2681_v14 = vsel %vm2642_vm3, %v4097_v48, 0.0  ;;  %vm6196_vm3 = vmand %vm6177_vm13, %vm2523_vm14  ;;  %vm2525_vm13 = vcmp.ge.s32.totalorder %v2464_v34, %v5563_v9  ;;  %vm2283_vm14 = vcmp.ge.s32.totalorder %v5533_v38, %v5555_v5  ;;  %v2470_v38 = vpop.permute.xlu0 %2469 }
 0x1f1   : > { %2721 = vst.msk [vmem:[%s5582_s8 + $0xc0] sm:$0xff] %vm2696_vm0, %v2681_v14  ;;  %v2783_v6 = vsel %vm2696_vm0, %v2681_v14, 0.0  ;;  %v2845_v49 = vmul.f32 %v2681_v14, %v2681_v14  ;;  %v1098_v50 = vpop.f32.mrb[50].mxu1  ;;  %v1983_v26 = vpop.f32.mrb[50].mxu0  ;;  %vm2645_vm9 = vmand %vm6196_vm3, %vm2606_vm4  ;;  %vm2608_vm3 = vcmp.lt.s32.totalorder %v2464_v34, %v5566_v20 }
 0x1f2   : > { %v2784_v52 = vadd.f32 %v2783_v6, %v2782_v41  ;;  %v4098_v55 = vadd.f32 %v1983_v26, %v1098_v50  ;;  %v3795_v61 = vpop.f32.mrb[51].mxu1  ;;  %v4033_v19 = vpop.f32.mrb[51].mxu0  ;;  %vm6249_vm4 = vmand %vm2283_vm14, %vm2327_vm15  ;;  %vm2329_vm14 = vcmp.lt.s32.totalorder %v5537_v42, %v5557_v1 }
 0x1f3   : > { %v2907_v13 = vsel %vm2696_vm0, %v2845_v49, 0.0 }
 0x1f4   : > { %v2908_v59 = vadd.f32 %v2907_v13, %v2906_v11  ;;  %v2682_v45 = vsel %vm2643_vm10, %v4098_v55, 0.0  ;;  %vm6220_vm10 = vmand %vm6201_vm5, %vm2524_vm6  ;;  %vm2526_vm5 = vcmp.ge.s32.totalorder %v2467_v35, %v5563_v9  ;;  %vm2284_vm6 = vcmp.ge.s32.totalorder %v5535_v39, %v5555_v5  ;;  %v2473_v39 = vpop.permute.xlu1 %2472 }
 0x1f5   : > { %2722 = vst.msk [vmem:[%s5582_s8 + $0xc8] sm:$0xff] %vm2696_vm0, %v2682_v45  ;;  %v2785_v57 = vsel %vm2696_vm0, %v2682_v45, 0.0  ;;  %v2846_v37 = vmul.f32 %v2682_v45, %v2682_v45  ;;  %v1103_v0 = vpop.f32.mrb[52].mxu1  ;;  %v1988_v8 = vpop.f32.mrb[52].mxu0  ;;  %vm2646_vm1 = vmand %vm6220_vm10, %vm2607_vm11  ;;  %vm2609_vm10 = vcmp.lt.s32.totalorder %v2467_v35, %v5566_v20 }
 0x1f6   : > { %v2786_v27 = vadd.f32 %v2785_v57, %v2784_v52  ;;  %v4099_v16 = vadd.f32 %v1988_v8, %v1103_v0  ;;  %v3798_v7 = vpop.f32.mrb[53].mxu1  ;;  %v4036_v17 = vpop.f32.mrb[53].mxu0  ;;  %vm6273_vm11 = vmand %vm2284_vm6, %vm2328_vm7  ;;  %vm2330_vm6 = vcmp.lt.s32.totalorder %v5539_v43, %v5557_v1 }
 0x1f7   : > { %v2909_v21 = vsel %vm2696_vm0, %v2846_v37, 0.0 }
 0x1f8   : > { %v2910_v28 = vadd.f32 %v2909_v21, %v2908_v59  ;;  %v2683_v51 = vsel %vm2644_vm2, %v4099_v16, 0.0  ;;  %vm6244_vm2 = vmand %vm6225_vm12, %vm2525_vm13  ;;  %vm2527_vm12 = vcmp.ge.s32.totalorder %v2470_v38, %v5563_v9  ;;  %vm2285_vm13 = vcmp.ge.s32.totalorder %v5537_v42, %v5555_v5  ;;  %v2476_v42 = vpop.permute.xlu0 %2475 }
 0x1f9   : > { %2723 = vst.msk [vmem:[%s5582_s8 + $0xd0] sm:$0xff] %vm2696_vm0, %v2683_v51  ;;  %v2787_v10 = vsel %vm2696_vm0, %v2683_v51, 0.0  ;;  %v2847_v29 = vmul.f32 %v2683_v51, %v2683_v51  ;;  %v1108_v33 = vpop.f32.mrb[54].mxu1  ;;  %v1993_v62 = vpop.f32.mrb[54].mxu0  ;;  %vm2647_vm8 = vmand %vm6244_vm2, %vm2608_vm3  ;;  %vm2610_vm2 = vcmp.lt.s32.totalorder %v2470_v38, %v5566_v20 }
 0x1fa   : > { %v2788_v36 = vadd.f32 %v2787_v10, %v2786_v27  ;;  %v4100_v30 = vadd.f32 %v1993_v62, %v1108_v33  ;;  %v3801_v46 = vpop.f32.mrb[55].mxu1  ;;  %v4039_v40 = vpop.f32.mrb[55].mxu0  ;;  %vm6297_vm3 = vmand %vm2285_vm13, %vm2329_vm14  ;;  %vm2331_vm13 = vcmp.lt.s32.totalorder %v5541_v53, %v5557_v1 }
 0x1fb   : > { %v2911_v58 = vsel %vm2696_vm0, %v2847_v29, 0.0 }
 0x1fc   : > { %v2912_v18 = vadd.f32 %v2911_v58, %v2910_v28  ;;  %v2684_v23 = vsel %vm2645_vm9, %v4100_v30, 0.0  ;;  %vm6268_vm9 = vmand %vm6249_vm4, %vm2526_vm5  ;;  %vm2528_vm4 = vcmp.ge.s32.totalorder %v2473_v39, %v5563_v9  ;;  %vm2286_vm5 = vcmp.ge.s32.totalorder %v5539_v43, %v5555_v5  ;;  %v2479_v43 = vpop.permute.xlu1 %2478 }
 0x1fd   : > { %2724 = vst.msk [vmem:[%s5582_s8 + $0xd8] sm:$0xff] %vm2696_vm0, %v2684_v23  ;;  %v2789_v41 = vsel %vm2696_vm0, %v2684_v23, 0.0  ;;  %v2848_v48 = vmul.f32 %v2684_v23, %v2684_v23  ;;  %v1113_v4 = vpop.f32.mrb[56].mxu1  ;;  %v1998_v3 = vpop.f32.mrb[56].mxu0  ;;  %vm2648_vm15 = vmand %vm6268_vm9, %vm2609_vm10  ;;  %vm2611_vm9 = vcmp.lt.s32.totalorder %v2473_v39, %v5566_v20 }
 0x1fe   : > { %v2790_v25 = vadd.f32 %v2789_v41, %v2788_v36  ;;  %v4101_v44 = vadd.f32 %v1998_v3, %v1113_v4  ;;  %v3804_v31 = vpop.f32.mrb[57].mxu1  ;;  %v4042_v11 = vpop.f32.mrb[57].mxu0  ;;  %vm6321_vm10 = vmand %vm2286_vm5, %vm2330_vm6  ;;  %vm2332_vm5 = vcmp.lt.s32.totalorder %v5543_v54, %v5557_v1 }
 0x1ff   : > { %v2913_v14 = vsel %vm2696_vm0, %v2848_v48, 0.0 }
 0x200   : > { %v2914_v6 = vadd.f32 %v2913_v14, %v2912_v18  ;;  %v2685_v49 = vsel %vm2646_vm1, %v4101_v44, 0.0  ;;  %vm6292_vm1 = vmand %vm6273_vm11, %vm2527_vm12  ;;  %vm2529_vm11 = vcmp.ge.s32.totalorder %v2476_v42, %v5563_v9  ;;  %vm2287_vm12 = vcmp.ge.s32.totalorder %v5541_v53, %v5555_v5  ;;  %v2482_v53 = vpop.permute.xlu0 %2481 }
 0x201   : > { %2725 = vst.msk [vmem:[%s5582_s8 + $0xe0] sm:$0xff] %vm2696_vm0, %v2685_v49  ;;  %v2791_v26 = vsel %vm2696_vm0, %v2685_v49, 0.0  ;;  %v2849_v52 = vmul.f32 %v2685_v49, %v2685_v49  ;;  %v1118_v55 = vpop.f32.mrb[58].mxu1  ;;  %v2003_v61 = vpop.f32.mrb[58].mxu0  ;;  %vm2649_vm7 = vmand %vm6292_vm1, %vm2610_vm2  ;;  %vm2612_vm1 = vcmp.lt.s32.totalorder %v2476_v42, %v5566_v20 }
 0x202   : > { %v2792_v19 = vadd.f32 %v2791_v26, %v2790_v25  ;;  %v4102_v13 = vadd.f32 %v2003_v61, %v1118_v55  ;;  %v3807_v56 = vpop.f32.mrb[59].mxu1  ;;  %v4045_v2 = vpop.f32.mrb[59].mxu0  ;;  %vm6345_vm2 = vmand %vm2287_vm12, %vm2331_vm13  ;;  %vm2333_vm12 = vcmp.lt.s32.totalorder %v5548_v60, %v5557_v1 }
 0x203   : > { %v2915_v59 = vsel %vm2696_vm0, %v2849_v52, 0.0 }
 0x204   : > { %v2916_v32 = vadd.f32 %v2915_v59, %v2914_v6  ;;  %v2686_v57 = vsel %vm2647_vm8, %v4102_v13, 0.0  ;;  %vm6316_vm8 = vmand %vm6297_vm3, %vm2528_vm4  ;;  %vm2530_vm3 = vcmp.ge.s32.totalorder %v2479_v43, %v5563_v9  ;;  %vm2288_vm4 = vcmp.ge.s32.totalorder %v5543_v54, %v5555_v5  ;;  %v2485_v54 = vpop.permute.xlu1 %2484 }
 0x205   : > { %2726 = vst.msk [vmem:[%s5582_s8 + $0xe8] sm:$0xff] %vm2696_vm0, %v2686_v57  ;;  %v2793_v0 = vsel %vm2696_vm0, %v2686_v57, 0.0  ;;  %v2850_v8 = vmul.f32 %v2686_v57, %v2686_v57  ;;  %v1123_v27 = vpop.f32.mrb[60].mxu1  ;;  %v2008_v16 = vpop.f32.mrb[60].mxu0  ;;  %vm2650_vm14 = vmand %vm6316_vm8, %vm2611_vm9  ;;  %vm2613_vm8 = vcmp.lt.s32.totalorder %v2479_v43, %v5566_v20 }
 0x206   : > { %v2794_v7 = vadd.f32 %v2793_v0, %v2792_v19  ;;  %v4103_v17 = vadd.f32 %v2008_v16, %v1123_v27  ;;  %v3810_v21 = vpop.f32.mrb[61].mxu1  ;;  %v4048_v22 = vpop.f32.mrb[61].mxu0  ;;  %vm6369_vm9 = vmand %vm2288_vm4, %vm2332_vm5  ;;  %vm2334_vm4 = vcmp.lt.s32.totalorder %v5550_v63, %v5557_v1 }
 0x207   : > { %v2917_v34 = vsel %vm2696_vm0, %v2850_v8, 0.0 }
 0x208   : > { %v2918_v51 = vadd.f32 %v2917_v34, %v2916_v32  ;;  %v2687_v24 = vsel %vm2648_vm15, %v4103_v17, 0.0  ;;  %vm6340_vm15 = vmand %vm6321_vm10, %vm2529_vm11  ;;  %vm2531_vm10 = vcmp.ge.s32.totalorder %v2482_v53, %v5563_v9  ;;  %vm2289_vm11 = vcmp.ge.s32.totalorder %v5548_v60, %v5555_v5  ;;  %v2488_v60 = vpop.permute.xlu0 %2487 }
 0x209   : > { %2727 = vst.msk [vmem:[%s5582_s8 + $0xf0] sm:$0xff] %vm2696_vm0, %v2687_v24  ;;  %v2795_v29 = vsel %vm2696_vm0, %v2687_v24, 0.0  ;;  %v2851_v33 = vmul.f32 %v2687_v24, %v2687_v24  ;;  %v1128_v62 = vpop.f32.mrb[62].mxu1  ;;  %v2013_v36 = vpop.f32.mrb[62].mxu0  ;;  %vm2651_vm6 = vmand %vm6340_vm15, %vm2612_vm1  ;;  %vm2614_vm15 = vcmp.lt.s32.totalorder %v2482_v53, %v5566_v20 }
 0x20a   : > { %v2796_v30 = vadd.f32 %v2795_v29, %v2794_v7  ;;  %v4104_v46 = vadd.f32 %v2013_v36, %v1128_v62  ;;  %v3813_v40 = vpop.f32.mrb[63].mxu1  ;;  %v4051_v58 = vpop.f32.mrb[63].mxu0  ;;  %vm6393_vm1 = vmand %vm2289_vm11, %vm2333_vm12 }
 0x20b   : > { %v2919_v47 = vsel %vm2696_vm0, %v2851_v33, 0.0 }
 0x20c   : > { %v2920_v18 = vadd.f32 %v2919_v47, %v2918_v51  ;;  %v2688_v23 = vsel %vm2649_vm7, %v4104_v46, 0.0  ;;  %vm6364_vm7 = vmand %vm6345_vm2, %vm2530_vm3  ;;  %vm2532_vm2 = vcmp.ge.s32.totalorder %v2485_v54, %v5563_v9  ;;  %vm2290_vm3 = vcmp.ge.s32.totalorder %v5550_v63, %v5555_v5  ;;  %v2248_v46 = vpop.permute.xlu1 %2247  ;;  %v2491_v63 = vpop.permute.xlu0 %2490 }
 0x20d   : > { %2728 = vst.msk [vmem:[%s5582_s8 + $0xf8] sm:$0xff] %vm2696_vm0, %v2688_v23  ;;  %v2797_v41 = vsel %vm2696_vm0, %v2688_v23, 0.0  ;;  %v2852_v48 = vmul.f32 %v2688_v23, %v2688_v23  ;;  %v1133_v4 = vpop.f32.mrb[64].mxu1  ;;  %v2018_v3 = vpop.f32.mrb[64].mxu0  ;;  %vm2652_vm13 = vmand %vm6364_vm7, %vm2613_vm8  ;;  %vm2615_vm7 = vcmp.lt.s32.totalorder %v2485_v54, %v5566_v20  ;;  %vm2335_vm11 = vcmp.lt.s32.totalorder %v2248_v46, %v5557_v1 }
 0x20e   : > { %v2798_v25 = vadd.f32 %v2797_v41, %v2796_v30  ;;  %v4105_v44 = vadd.f32 %v2018_v3, %v1133_v4  ;;  %v3816_v31 = vpop.f32.mrb[65].mxu1  ;;  %v4054_v11 = vpop.f32.mrb[65].mxu0  ;;  %vm6419_vm8 = vmand %vm2290_vm3, %vm2334_vm4  ;;  %vm2617_vm4 = vcmp.lt.s32.totalorder %v2491_v63, %v5566_v20 }
 0x20f   : > { %v2921_v14 = vsel %vm2696_vm0, %v2852_v48, 0.0 }
 0x210   : > { %v2922_v38 = vadd.f32 %v2921_v14, %v2920_v18  ;;  %v2689_v6 = vsel %vm2650_vm14, %v4105_v44, 0.0  ;;  %vm6388_vm14 = vmand %vm6369_vm9, %vm2531_vm10  ;;  %vm2533_vm9 = vcmp.ge.s32.totalorder %v2488_v60, %v5563_v9  ;;  %vm2291_vm10 = vcmp.ge.s32.totalorder %v2248_v46, %v5555_v5 }
 0x211   : > { %2729 = vst.msk [vmem:[%s5582_s8 + $0x100] sm:$0xff] %vm2696_vm0, %v2689_v6  ;;  %v2799_v50 = vsel %vm2696_vm0, %v2689_v6, 0.0  ;;  %v2853_v26 = vmul.f32 %v2689_v6, %v2689_v6  ;;  %v1138_v52 = vpop.f32.mrb[66].mxu1  ;;  %v2023_v55 = vpop.f32.mrb[66].mxu0  ;;  %vm2653_vm5 = vmand %vm6388_vm14, %vm2614_vm15  ;;  %vm2616_vm14 = vcmp.lt.s32.totalorder %v2488_v60, %v5566_v20 }
 0x212   : > { %v2800_v61 = vadd.f32 %v2799_v50, %v2798_v25  ;;  %v4106_v19 = vadd.f32 %v2023_v55, %v1138_v52  ;;  %v3819_v13 = vpop.f32.mrb[67].mxu1  ;;  %v4057_v56 = vpop.f32.mrb[67].mxu0  ;;  %vm2374_vm15 = vmand %vm2291_vm10, %vm2335_vm11 }
 0x213   : > { %v2923_v2 = vsel %vm2696_vm0, %v2853_v26, 0.0 }
 0x214   : > { %v2924_v45 = vadd.f32 %v2923_v2, %v2922_v38  ;;  %v2690_v39 = vsel %vm2651_vm6, %v4106_v19, 0.0  ;;  %vm6414_vm6 = vmand %vm6393_vm1, %vm2532_vm2  ;;  %vm2534_vm1 = vcmp.ge.s32.totalorder %v2491_v63, %v5563_v9 }
 0x215   : > { %2730 = vst.msk [vmem:[%s5582_s8 + $0x108] sm:$0xff] %vm2696_vm0, %v2690_v39  ;;  %v2801_v57 = vsel %vm2696_vm0, %v2690_v39, 0.0  ;;  %v2854_v37 = vmul.f32 %v2690_v39, %v2690_v39  ;;  %v1143_v0 = vpop.f32.mrb[68].mxu1  ;;  %v2028_v8 = vpop.f32.mrb[68].mxu0  ;;  %vm2654_vm12 = vmand %vm6414_vm6, %vm2615_vm7 }
 0x216   : > { %v2802_v27 = vadd.f32 %v2801_v57, %v2800_v61  ;;  %v4107_v16 = vadd.f32 %v2028_v8, %v1143_v0  ;;  %v3822_v7 = vpop.f32.mrb[69].mxu1  ;;  %v4060_v17 = vpop.f32.mrb[69].mxu0  ;;  %vm2573_vm3 = vmand %vm2374_vm15, %vm2534_vm1 }
 0x217   : > { %v2925_v21 = vsel %vm2696_vm0, %v2854_v37, 0.0 }
 0x218   : > { %v2926_v34 = vadd.f32 %v2925_v21, %v2924_v45  ;;  %v2691_v28 = vsel %vm2652_vm13, %v4107_v16, 0.0  ;;  %vm6436_vm13 = vmand %vm6419_vm8, %vm2533_vm9 }
 0x219   : > { %2731 = vst.msk [vmem:[%s5582_s8 + $0x110] sm:$0xff] %vm2696_vm0, %v2691_v28  ;;  %v2803_v51 = vsel %vm2696_vm0, %v2691_v28, 0.0  ;;  %v2855_v24 = vmul.f32 %v2691_v28, %v2691_v28  ;;  %v1148_v10 = vpop.f32.mrb[70].mxu1  ;;  %v2033_v29 = vpop.f32.mrb[70].mxu0  ;;  %vm2655_vm2 = vmand %vm6436_vm13, %vm2616_vm14 }
 0x21a   : > { %v2804_v33 = vadd.f32 %v2803_v51, %v2802_v27  ;;  %v4108_v62 = vadd.f32 %v2033_v29, %v1148_v10  ;;  %v3825_v36 = vpop.f32.mrb[71].mxu1  ;;  %v4063_v30 = vpop.f32.mrb[71].mxu0 }
 0x21b   : > { %v2927_v40 = vsel %vm2696_vm0, %v2855_v24, 0.0 }
 0x21c   : > { %v2928_v47 = vadd.f32 %v2927_v40, %v2926_v34  ;;  %v2692_v35 = vsel %vm2653_vm5, %v4108_v62, 0.0  ;;  %vm2656_vm5 = vmand %vm2573_vm3, %vm2617_vm4 }
 0x21d   : > { %2732 = vst.msk [vmem:[%s5582_s8 + $0x118] sm:$0xff] %vm2696_vm0, %v2692_v35  ;;  %v2805_v18 = vsel %vm2696_vm0, %v2692_v35, 0.0  ;;  %v2856_v23 = vmul.f32 %v2692_v35, %v2692_v35  ;;  %v1153_v12 = vpop.f32.mrb[72].mxu1  ;;  %v2038_v41 = vpop.f32.mrb[72].mxu0 }
 0x21e   : > { %v2806_v48 = vadd.f32 %v2805_v18, %v2804_v33  ;;  %v4109_v4 = vadd.f32 %v2038_v41, %v1153_v12  ;;  %v3828_v3 = vpop.f32.mrb[73].mxu1  ;;  %v4066_v25 = vpop.f32.mrb[73].mxu0 }
 0x21f   : > { %v2929_v44 = vsel %vm2696_vm0, %v2856_v23, 0.0 }
 0x220   : > { %v2930_v5 = vadd.f32 %v2929_v44, %v2928_v47  ;;  %v2693_v1 = vsel %vm2654_vm12, %v4109_v4, 0.0 }
 0x221   : > { %2733 = vst.msk [vmem:[%s5582_s8 + $0x120] sm:$0xff] %vm2696_vm0, %v2693_v1  ;;  %v2807_v11 = vsel %vm2696_vm0, %v2693_v1, 0.0  ;;  %v2857_v14 = vmul.f32 %v2693_v1, %v2693_v1  ;;  %v1158_v15 = vpop.f32.mrb[74].mxu1  ;;  %v2043_v53 = vpop.f32.mrb[74].mxu0 }
 0x222   : > { %v2808_v38 = vadd.f32 %v2807_v11, %v2806_v48  ;;  %v4110_v6 = vadd.f32 %v2043_v53, %v1158_v15  ;;  %v3831_v49 = vpop.f32.mrb[75].mxu1  ;;  %v4069_v50 = vpop.f32.mrb[75].mxu0 }
 0x223   : > { %v2931_v26 = vsel %vm2696_vm0, %v2857_v14, 0.0 }
 0x224   : > { %v2932_v9 = vadd.f32 %v2931_v26, %v2930_v5  ;;  %v2694_v52 = vsel %vm2655_vm2, %v4110_v6, 0.0 }
 0x225   : > { %2734 = vst.msk [vmem:[%s5582_s8 + $0x128] sm:$0xff] %vm2696_vm0, %v2694_v52  ;;  %v2809_v55 = vsel %vm2696_vm0, %v2694_v52, 0.0  ;;  %v2858_v61 = vmul.f32 %v2694_v52, %v2694_v52  ;;  %v1163_v19 = vpop.f32.mrb[76].mxu1  ;;  %v2048_v13 = vpop.f32.mrb[76].mxu0 }
 0x226   : > { %v2810_v56 = vadd.f32 %v2809_v55, %v2808_v38  ;;  %v4111_v2 = vadd.f32 %v2048_v13, %v1163_v19  ;;  %v3834_v59 = vpop.f32.mrb[77].mxu1  ;;  %v4072_v54 = vpop.f32.mrb[77].mxu0 }
 0x227   : > { %v2933_v45 = vsel %vm2696_vm0, %v2858_v61, 0.0 }
 0x228   : > { %v2934_v39 = vadd.f32 %v2933_v45, %v2932_v9  ;;  %v2695_v20 = vsel %vm2656_vm5, %v4111_v2, 0.0 }
 0x229   : > { %2735 = vst.msk [vmem:[%s5582_s8 + $0x130] sm:$0xff] %vm2696_vm0, %v2695_v20  ;;  %v2811_v32 = vsel %vm2696_vm0, %v2695_v20, 0.0  ;;  %v2859_v57 = vmul.f32 %v2695_v20, %v2695_v20  ;;  %s4455_s8 = smov [#allocation2]  }
 0x22a   : > { %v2812_v37 = vadd.f32 %v2811_v32, %v2810_v56  ;;  %s4343_s30 = sshll.u32 %s4455_s8, 4  ;;  %s4344_s30 = int_to_ptr.vmem [resolvable:$false] %s4343_s30 }
 0x22b   : > { %v2935_v0 = vsel %vm2696_vm0, %v2859_v57, 0.0  ;;  %vm2819_vm0 = vcmask 253952   ;;  %s4345_s17 = scalar_lea.vmem %s4344_s30, 32  ;;  %p4346_p1 = scmp.lt.s32.totalorder %s6470_s13, %s4344_s30 }
 0x22c   : > { %v2813_v8 = vrot.slane %v2812_v37, 4  ;;  %v2936_v27 = vadd.f32 %v2935_v0, %v2934_v39  ;;  %p4347_p2 = scmp.lt.s32.totalorder %s4345_s17, %s4339_s28 }
 0x22e   : > { %v2814_v16 = vadd.f32 %v2813_v8, %v2812_v37  ;;  %v2937_v7 = vrot.slane %v2936_v27, 4  ;;  %p4348_p3 = por %p4347_p2, %p4346_p1 }
 0x230   : > { %v2815_v17 = vrot.slane %v2814_v16, 2  ;;  %v2938_v21 = vadd.f32 %v2937_v7, %v2936_v27  ;;  %p4349_p5 = pnand %p4348_p3, %p4342_p0 }
 0x232   : > { %v2816_v22 = vadd.f32 %v2815_v17, %v2814_v16  ;;  %v2939_v60 = vrot.slane %v2938_v21, 2 }
 0x234   : > { %v2817_v34 = vrot.slane %v2816_v22, 1  ;;  %v2940_v28 = vadd.f32 %v2939_v60, %v2938_v21 }
 0x236   : > { %v2818_v42 = vadd.f32 %v2817_v34, %v2816_v22  ;;  %v2941_v51 = vrot.slane %v2940_v28, 1 }
 0x238   : > { %2820 = vst.msk [vmem:[%s292_s12] sm:$0x1] %vm2819_vm0, %v2818_v42  ;;  %v2942_v24 = vadd.f32 %v2941_v51, %v2940_v28 }
 0x239   : > { %4352 = shalt.err (!%p4349_p5)
}
 0x23a   : > { %s4353_s11 = scalar_lea.hbm %s6468_s18, 16  ;;  %s4357_s19 = scalar_lea.hbm %s6554_s5, 32 }
 0x23b   : > { %p4354_p6 = scmp.ne.s32.totalorder %s6468_s18, %s4353_s11  ;;  %p4358_p10 = scmp.lt.u32.totalorder %s6468_s18, %s6554_s5 }
 0x23c   : > { %p4359_p11 = scmp.lt.u32.totalorder %s4357_s19, %s4353_s11  ;;  %p4361_p13 = scmp.lt.u32.totalorder %s4353_s11, %s6468_s18 }
 0x23d   : > { %p4355_p7 = pnand %p4354_p6, %p4532_p4 }
 0x23e   : > { %p4360_p12 = por %p4359_p11, %p4358_p10 }
 0x23f   : > { %p4356_p9 = pneg %p4355_p7 }
 0x240   : > { %p4362_p0 = por %p4361_p13, %p4360_p12 }
 0x242   : > { %p4363_p1 = pnand %p4362_p0, %p4356_p9 }
 0x244   : > { %4366 = shalt.err (!%p4363_p1)
}
 0x245   : > { %4270 = dma.vmem_to_hbm [thread:$0]  (%p4532_p4), %s6470_s13, 16, %s6468_s18, %s2954_s27   ;;  %2943 = vst.msk [vmem:[%s298_s14] sm:$0x1] %vm2819_vm0, %v2942_v24 }
 0x246   : > { %s2958_s28 = scalar_lea.sflag [#allocation5], %s6458_s15  ;;  %s4367_s17 = scalar_lea.vmem %s6478_s16, 16 }
 0x247   : > { %p4368_p2 = scmp.ne.s32.totalorder %s6478_s16, %s4367_s17  ;;  %s4456_s11 = smov [#allocation4]  }
 0x248   : > { %s4371_s12 = sshll.u32 %s4456_s11, 4  ;;  %s4372_s12 = int_to_ptr.vmem [resolvable:$false] %s4371_s12 }
 0x249   : > { %p4369_p3 = pnand %p4368_p2, %p4532_p4  ;;  %s4373_s24 = scalar_lea.vmem %s4372_s12, 32 }
 0x24a   : > { %p4374_p6 = scmp.lt.s32.totalorder %s6478_s16, %s4372_s12  ;;  %p4375_p7 = scmp.lt.s32.totalorder %s4373_s24, %s4367_s17 }
 0x24b   : > { %p4370_p5 = pneg %p4369_p3 }
 0x24c   : > { %p4376_p9 = por %p4375_p7, %p4374_p6 }
 0x24e   : > { %p4377_p10 = pnand %p4376_p9, %p4370_p5 }
 0x250   : > { %4380 = shalt.err (!%p4377_p10)
}
 0x251   : > { %s4381_s15 = scalar_lea.hbm %s6476_s20, 16  ;;  %s4385_s18 = scalar_lea.hbm %s6555_s6, 32 }
 0x252   : > { %p4382_p11 = scmp.ne.s32.totalorder %s6476_s20, %s4381_s15  ;;  %p4386_p0 = scmp.lt.u32.totalorder %s6476_s20, %s6555_s6 }
 0x253   : > { %p4387_p1 = scmp.lt.u32.totalorder %s4385_s18, %s4381_s15  ;;  %p4389_p3 = scmp.lt.u32.totalorder %s4381_s15, %s6476_s20 }
 0x254   : > { %p4383_p12 = pnand %p4382_p11, %p4532_p4 }
 0x255   : > { %p4388_p2 = por %p4387_p1, %p4386_p0 }
 0x256   : > { %p4384_p13 = pneg %p4383_p12 }
 0x257   : > { %p4390_p5 = por %p4389_p3, %p4388_p2 }
 0x259   : > { %p4391_p6 = pnand %p4390_p5, %p4384_p13 }
 0x25b   : > { %4394 = shalt.err (!%p4391_p6)
}
 0x25c   : > { %4271 = dma.vmem_to_hbm [thread:$0]  (%p4532_p4), %s6478_s16, 16, %s6476_s20, %s2958_s28  }
 0x25d PF: > { %p4281_p7 = scmp.ge.s32.totalorder %s4449_s26, 2  ;;  %s3013_s8 = sand.u32 1, %s4429_s21  }
 0x25e   : > { %s3014_s30 = scalar_lea.sflag [#allocation3], %s3013_s8 }
 0x25f   : > { %p4275_p9 = pnand %p4281_p7, %p4539_p8 }
 0x261   : > { %4420 = dma.done.wait (!%p4275_p9), %s3014_s30, 16  }
 0x262   : > { %4422 = vsyncadd (!%p4275_p9), %s3014_s30, 4294967280  ;;  %s3022_s17 = scalar_lea.sflag [#allocation5], %s3013_s8 }
 0x263   : > { %4424 = dma.done.wait (!%p4275_p9), %s3022_s17, 16  }
 0x264   : > { %4426 = vsyncadd (!%p4275_p9), %s3022_s17, 4294967280  ;;  %s23_s26 = sadd.s32 1, %s4449_s26   ;;  %s6700_s21 = smov %s4433_s22 }
 0x265   : > { %p20_p10 = scmp.ge.s32.totalorder %s23_s26, 4   ;;  %s6701_s22 = smov %s4437_s23 }
 0x266   : > { %s6702_s23 = smov %s4545_s10  ;;  %s6703_s24 = smov %s4445_s25 }
 0x267   : > { %s6704_s25 = smov %s6706_s29  ;;  %22 = sbr.rel (!%p20_p10) target bundleno = 6 (0x6), region = 110 }
 0x26e   :  { %3026 = vsyncpa [#allocation3], 1 }
 0x26f   :  { %3028 = vsyncpa [#allocation3 + $0x1], 1 }
 0x270   :  { %3029 = vsyncpa [#allocation5], 1 }
 0x271   :  { %3031 = vsyncpa [#allocation5 + $0x1], 1 }

</bundles_post_ra>
